<compile_context>
chip_gen: v7x
topology: tpu7x:2x2x1
jax: 0.10.0
libtpu: 0.0.40
codegen_flags: <defaults>
</compile_context>

<pallas_src>
import functools

import jax
import jax.numpy as jnp
from jax.experimental import pallas as pl
from jax.experimental.pallas import tpu as pltpu

NEG_SLOPE = 0.01  # torch.nn.LeakyReLU default


def _leaky_relu(x):
  return jnp.where(x >= 0, x, NEG_SLOPE * x)


def _gcn_layer(a, x_in, w_ref, b_ref, cdt, xw_first):
  """One GCNConv + LeakyReLU on the flattened (B*N, .) slab.

  xw_first is a *static* Python bool: put the narrower inner dim on the BN x BN
  adjacency matmul (A(XW) vs (AX)W are mathematically identical).
  """
  if xw_first:
    h = jnp.dot(x_in.astype(cdt), w_ref[...], preferred_element_type=jnp.float32)
    h = jnp.dot(a, h.astype(cdt), preferred_element_type=jnp.float32) + b_ref[...]
  else:
    h = jnp.dot(a, x_in.astype(cdt), preferred_element_type=jnp.float32)
    h = jnp.dot(h.astype(cdt), w_ref[...], preferred_element_type=jnp.float32) + b_ref[...]
  return _leaky_relu(h)


def feature_generator_kernel(
    x_ref, adj_ref, pool_ref, eps_ref,
    w1_ref, b1_ref, w2_ref, b2_ref,
    wgm_ref, bgm_ref, wgs_ref, bgs_ref,
    feat_ref, mu_ref, sigma_ref, homsum_ref,
    *, block_inj, feat_lim_min, feat_lim_max, l1_xw_first):
  B = block_inj
  cdt = w1_ref.dtype                 # MXU dtype; accumulation is always f32

  x = x_ref[0]                       # (B*N, F)   f32 raw subset features (B subgraphs stacked)
  a = adj_ref[0]                     # (B*N, B*N) block-diagonal normalized adjacency (cdt)
  pool = pool_ref[0]                 # (3B, B*N)  rows: [1/N mean | inj one-hot | tgt/n_tgt]
  eps = eps_ref[0]                   # (B, F)     N(0,1) noise for rsample()

  # GCNConv 1 + GCNConv 2 (each: A_hat X W + b, LeakyReLU) on the flattened slab
  h = _gcn_layer(a, x, w1_ref, b1_ref, cdt, xw_first=l1_xw_first)     # (B*N, H) f32
  h = _gcn_layer(a, h, w2_ref, b2_ref, cdt, xw_first=True)            # (B*N, H) f32

  # pooled readouts for every subgraph in one matmul
  pooled = jnp.dot(pool, h, preferred_element_type=jnp.float32)       # (3B, H)
  hm = pooled[0 * B:1 * B]           # (B, H)  mean over all nodes
  hi = pooled[1 * B:2 * B]           # (B, H)  injected-node row
  ht = pooled[2 * B:3 * B]           # (B, H)  mean over target nodes

  # ru_inj: mean of *raw* features over target nodes
  ru = jnp.dot(pool[2 * B:3 * B], x, preferred_element_type=jnp.float32)   # (B, F)

  # generator Linear (3H -> F, twice) applied as three (H, F) slabs summed (no lane concat)
  mu_pre = (jnp.dot(hm, wgm_ref[0], preferred_element_type=jnp.float32)
            + jnp.dot(hi, wgm_ref[1], preferred_element_type=jnp.float32)
            + jnp.dot(ht, wgm_ref[2], preferred_element_type=jnp.float32)
            + bgm_ref[...])
  sig_pre = (jnp.dot(hm, wgs_ref[0], preferred_element_type=jnp.float32)
             + jnp.dot(hi, wgs_ref[1], preferred_element_type=jnp.float32)
             + jnp.dot(ht, wgs_ref[2], preferred_element_type=jnp.float32)
             + bgs_ref[...])
  mu = _leaky_relu(mu_pre)
  sigma = jnp.abs(_leaky_relu(sig_pre)) + 1e-9

  # Normal(mu, sigma).rsample() with externally supplied N(0,1) noise, then clamp
  feat = jnp.clip(mu + sigma * eps, feat_lim_min, feat_lim_max)

  # per-row cosine similarity; torch clamps each norm separately at eps=1e-8
  cs_eps = 1e-8
  num = jnp.sum(ru * feat, axis=-1, keepdims=True)                    # (B, 1)
  ru_n = jnp.maximum(jnp.sqrt(jnp.sum(ru * ru, axis=-1, keepdims=True)), cs_eps)
  ft_n = jnp.maximum(jnp.sqrt(jnp.sum(feat * feat, axis=-1, keepdims=True)), cs_eps)
  hom = num / (ru_n * ft_n)          # padded rows have ru == 0 -> hom == 0 exactly

  # dense, full-block stores (no dynamic masked row writes)
  feat_ref[0] = feat
  mu_ref[0] = mu
  sigma_ref[0] = sigma
  homsum_ref[0] = jnp.sum(hom, axis=0, keepdims=True)                 # one scalar per block


def _round_up(x, m):
  return ((x + m - 1) // m) * m


def choose_block_inj(inj_num, n_sub):
  """Injections per grid step.  B*n_sub rows feed the MXU; B is a multiple of 8 sublanes."""
  b = max(8, _round_up(max(1, 256 // max(n_sub, 1)), 8))
  # keep the per-step block-diagonal adjacency small; safe for v7x's 64 MiB VMEM too
  while b > 8 and (b * n_sub) * (b * n_sub) * 4 > (4 << 20):
    b -= 8
  return min(b, _round_up(inj_num, 8))


def _block_diag(m):
  """(nb, B, r, c) -> (nb, B*r, B*c) with the per-b blocks on the diagonal (plain-JAX glue)."""
  nb, B, r, c = m.shape
  eye = jnp.eye(B, dtype=m.dtype)
  return jnp.einsum('cbij,bd->cbidj', m, eye).reshape(nb, B * r, B * c)


def feature_generator_forward(feats_sub, adj, tmask, injoh, eps, params,
                              feat_lim_min, feat_lim_max,
                              block_inj=None, compute_dtype=jnp.bfloat16):
  inj_num, n_sub, in_feats = feats_sub.shape
  h_feats = params["w1"].shape[1]
  f32 = jnp.float32

  B = choose_block_inj(inj_num, n_sub) if block_inj is None else block_inj
  assert B % 8 == 0, "block_inj must be a multiple of 8 (sublane packing)"
  inj_pad = _round_up(inj_num, B)
  num_blocks = inj_pad // B
  BN = B * n_sub
  pad = inj_pad - inj_num

  # ---- host-side (plain-JAX) packing glue -------------------------------------------------
  feats_p = jnp.pad(feats_sub.astype(f32), ((0, pad), (0, 0), (0, 0)))
  adj_p = jnp.pad(adj.astype(f32), ((0, pad), (0, 0), (0, 0)))
  tmask_p = jnp.pad(tmask.astype(f32), ((0, pad), (0, 0)))
  injoh_p = jnp.pad(injoh.astype(f32), ((0, pad), (0, 0)))
  eps_p = jnp.pad(eps.astype(f32), ((0, pad), (0, 0)))

  valid = (jnp.arange(inj_pad) < inj_num).astype(f32)[:, None]        # zero-out padded rows
  n_tgt = jnp.maximum(jnp.sum(tmask_p, axis=-1, keepdims=True), 1.0)  # guard n_tgt == 0
  p_mean = jnp.full((inj_pad, n_sub), 1.0 / n_sub, f32) * valid
  p_inj = injoh_p * valid
  p_tgt = (tmask_p / n_tgt) * valid

  def rows_bd(m2d):   # (inj_pad, n_sub) -> (num_blocks, B, B*n_sub) block-diagonal rows
    return _block_diag(m2d.reshape(num_blocks, B, 1, n_sub))

  pool = jnp.concatenate([rows_bd(p_mean), rows_bd(p_inj), rows_bd(p_tgt)], axis=1)
  adj_bd = _block_diag(adj_p.reshape(num_blocks, B, n_sub, n_sub)).astype(compute_dtype)
  x_blocks = feats_p.reshape(num_blocks, BN, in_feats)
  eps_blocks = eps_p.reshape(num_blocks, B, in_feats)

  w1 = params["w1"].astype(compute_dtype)
  w2 = params["w2"].astype(compute_dtype)
  b1 = params["b1"].astype(f32)
  b2 = params["b2"].astype(f32)
  wgm = params["wg_mu"].astype(f32).reshape(3, h_feats, in_feats)     # pre-split generator
  wgs = params["wg_sig"].astype(f32).reshape(3, h_feats, in_feats)
  bgm = params["bg_mu"].astype(f32)
  bgs = params["bg_sig"].astype(f32)

  # ---- pallas call ------------------------------------------------------------------------
  kernel = functools.partial(
      feature_generator_kernel, block_inj=B,
      feat_lim_min=feat_lim_min, feat_lim_max=feat_lim_max,
      # run the BN x BN adjacency matmul over the narrower of {F, H} in layer 1
      l1_xw_first=(in_feats >= h_feats))

  def block3(shape):
    return pl.BlockSpec(shape, lambda i: (i, 0, 0))

  def full2(arr):
    return pl.BlockSpec(arr.shape, lambda i: (0, 0))

  def full3(arr):
    return pl.BlockSpec(arr.shape, lambda i: (0, 0, 0))

  in_specs = [
      block3((1, BN, in_feats)),       # flattened subset features
      block3((1, BN, BN)),             # block-diagonal normalized adjacency
      block3((1, 3 * B, BN)),          # pooling matrix (mean | inj | tgt), fused side inputs
      block3((1, B, in_feats)),        # eps noise
      full2(w1), full2(b1), full2(w2), full2(b2),
      full3(wgm), full2(bgm), full3(wgs), full2(bgs),
  ]
  out_specs = [
      block3((1, B, in_feats)),        # feat
      block3((1, B, in_feats)),        # mu
      block3((1, B, in_feats)),        # sigma
      block3((1, 1, 1)),               # per-block homophily sum
  ]
  out_shape = [
      jax.ShapeDtypeStruct((num_blocks, B, in_feats), f32),
      jax.ShapeDtypeStruct((num_blocks, B, in_feats), f32),
      jax.ShapeDtypeStruct((num_blocks, B, in_feats), f32),
      jax.ShapeDtypeStruct((num_blocks, 1, 1), f32),
  ]

  feat_b, mu_b, sigma_b, hom_b = pl.pallas_call(
      kernel,
      out_shape=out_shape,
      grid_spec=pltpu.PrefetchScalarGridSpec(
          num_scalar_prefetch=0,
          grid=(num_blocks,),
          in_specs=in_specs,
          out_specs=out_specs),
      compiler_params=pltpu.CompilerParams(
          dimension_semantics=("parallel",)),   # blocks are independent -> 2-TC on v7x
  )(x_blocks, adj_bd, pool, eps_blocks, w1, b1, w2, b2, wgm, bgm, wgs, bgs)

  feat = feat_b.reshape(inj_pad, in_feats)[:inj_num]
  mu = mu_b.reshape(inj_pad, in_feats)[:inj_num]
  sigma = sigma_b.reshape(inj_pad, in_feats)[:inj_num]
  hom_mean = jnp.sum(hom_b) / inj_num          # padded rows contribute exactly 0
  return feat, (mu, sigma), hom_mean


def build_norm_adj(edge_index, n):
  """Dense  D^-1/2 (A + I) D^-1/2  from a local (2, E) edge index.  (plain-JAX glue)"""
  a = jnp.zeros((n, n), jnp.float32)
  a = a.at[edge_index[0], edge_index[1]].set(1.0)
  a = jnp.maximum(a, jnp.eye(n, dtype=jnp.float32))          # add self loops
  dinv = 1.0 / jnp.sqrt(a.sum(axis=1))
  return a * dinv[:, None] * dinv[None, :]


def reference_forward(feats_sub, adj, tmask, injoh, eps, params, lim_min, lim_max):
  """Plain-JAX mirror of the torch forward (continuous branch), for correctness checking."""
  f32 = jnp.float32
  x = feats_sub.astype(f32)
  a = adj.astype(f32)
  h = jnp.einsum('inf,fh->inh', x, params["w1"].astype(f32))
  h = jnp.einsum('inm,imh->inh', a, h) + params["b1"]
  h = _leaky_relu(h)
  h = jnp.einsum('inh,hk->ink', h, params["w2"].astype(f32))
  h = jnp.einsum('inm,imh->inh', a, h) + params["b2"]
  h = _leaky_relu(h)
  n_tgt = jnp.maximum(jnp.sum(tmask, -1, keepdims=True), 1.0)
  hm = jnp.mean(h, axis=1)
  hi = jnp.einsum('in,inh->ih', injoh, h)
  ht = jnp.einsum('in,inh->ih', tmask, h) / n_tgt
  hidden = jnp.concatenate([hm, hi, ht], axis=-1)
  mu = _leaky_relu(hidden @ params["wg_mu"] + params["bg_mu"])
  sigma = jnp.abs(_leaky_relu(hidden @ params["wg_sig"] + params["bg_sig"])) + 1e-9
  feat = jnp.clip(mu + sigma * eps, lim_min, lim_max)
  ru = jnp.einsum('in,inf->if', tmask, x) / n_tgt
  num = jnp.sum(ru * feat, -1)
  den = (jnp.maximum(jnp.sqrt(jnp.sum(ru * ru, -1)), 1e-8)
         * jnp.maximum(jnp.sqrt(jnp.sum(feat * feat, -1)), 1e-8))
  return feat, mu, sigma, jnp.mean(num / den)


if __name__ == "__main__":
  key = jax.random.PRNGKey(0)
  num_nodes, in_feats, h_feats = 32, 16, 32
  n_sub, inj_num, n_targets, n_edges = 16, 2, 4, 40
  feat_lim_min, feat_lim_max = -1.0, 1.0

  keys = jax.random.split(key, 12)
  features_tensor = jax.random.normal(keys[0], (num_nodes, in_feats), jnp.float32)

  # per-injection subgraph data (local node indexing inside each subset)
  all_subset = [jax.random.permutation(keys[1 + i], num_nodes)[:n_sub]
                for i in range(inj_num)]
  all_edge_index = [jax.random.randint(keys[3 + i], (2, n_edges), 0, n_sub)
                    for i in range(inj_num)]
  remains = [jnp.arange(1, 1 + n_targets, dtype=jnp.int32) for _ in range(inj_num)]
  all_mapping = [jnp.array([0], dtype=jnp.int32) for _ in range(inj_num)]

  # glue: gathers / dense normalized adjacency / masks
  feats_sub = jnp.stack([features_tensor[s] for s in all_subset])           # (inj, N, F)
  adj = jnp.stack([build_norm_adj(e, n_sub) for e in all_edge_index])       # (inj, N, N)
  tmask = jnp.stack([jnp.zeros((n_sub,), jnp.float32).at[r].set(1.0)
                     for r in remains])                                     # (inj, N)
  injoh = jnp.stack([jnp.zeros((n_sub,), jnp.float32).at[m].set(1.0)
                     for m in all_mapping])                                 # (inj, N)
  eps = jax.random.normal(keys[5], (inj_num, in_feats), jnp.float32)        # (inj, F)

  # deterministic parameter init (generator (3H -> 2F) stored pre-split into mu/sigma halves)
  def glorot(k, shape):
    lim = (6.0 / (shape[0] + shape[1])) ** 0.5
    return jax.random.uniform(k, shape, jnp.float32, -lim, lim)

  params = dict(
      w1=glorot(keys[6], (in_feats, h_feats)),
      b1=jnp.zeros((1, h_feats), jnp.float32),
      w2=glorot(keys[7], (h_feats, h_feats)),
      b2=jnp.zeros((1, h_feats), jnp.float32),
      wg_mu=glorot(keys[8], (3 * h_feats, in_feats)),
      bg_mu=jax.random.uniform(keys[9], (1, in_feats), jnp.float32, -0.1, 0.1),
      wg_sig=glorot(keys[10], (3 * h_feats, in_feats)),
      bg_sig=jax.random.uniform(keys[11], (1, in_feats), jnp.float32, -0.1, 0.1),
  )

  # 1) f32 matmul path: numeric check against the plain-JAX reference
  feat32, (mu32, sig32), hom32 = feature_generator_forward(
      feats_sub, adj, tmask, injoh, eps, params, feat_lim_min, feat_lim_max,
      compute_dtype=jnp.float32)
  rfeat, rmu, rsig, rhom = reference_forward(
      feats_sub, adj, tmask, injoh, eps, params, feat_lim_min, feat_lim_max)
  jax.block_until_ready((feat32, mu32, sig32, hom32))
  assert feat32.shape == (inj_num, in_feats)
  assert jnp.allclose(feat32, rfeat, atol=5e-2, rtol=5e-2)
  assert jnp.allclose(mu32, rmu, atol=5e-2, rtol=5e-2)
  assert jnp.allclose(sig32, rsig, atol=5e-2, rtol=5e-2)
  assert jnp.allclose(hom32, rhom, atol=5e-2, rtol=5e-2)

  # 2) default bf16-matmul path (f32 accumulation / elementwise)
  feat, (mu, sigma), hom_mean = feature_generator_forward(
      feats_sub, adj, tmask, injoh, eps, params, feat_lim_min, feat_lim_max)
  jax.block_until_ready((feat, mu, sigma, hom_mean))
  assert feat.shape == (inj_num, in_feats)
  assert mu.shape == (inj_num, in_feats) and sigma.shape == (inj_num, in_feats)
  assert hom_mean.shape == ()
  assert bool(jnp.all(jnp.isfinite(feat))) and bool(jnp.isfinite(hom_mean))
  print("KERNEL_OK")
</pallas_src>

<mosaic_0001>
module attributes {stable_mosaic.version = 11 : i64} {
  func.func @feature_generator_kernel(%arg0: i32, %arg1: memref<1x128x16xf32, #tpu.memory_space<vmem>>, %arg2: memref<1x128x128xf32, #tpu.memory_space<vmem>>, %arg3: memref<1x24x128xf32, #tpu.memory_space<vmem>>, %arg4: memref<1x8x16xf32, #tpu.memory_space<vmem>>, %arg5: memref<16x32xf32, #tpu.memory_space<vmem>>, %arg6: memref<1x32xf32, #tpu.memory_space<vmem>>, %arg7: memref<32x32xf32, #tpu.memory_space<vmem>>, %arg8: memref<1x32xf32, #tpu.memory_space<vmem>>, %arg9: memref<3x32x16xf32, #tpu.memory_space<vmem>>, %arg10: memref<1x16xf32, #tpu.memory_space<vmem>>, %arg11: memref<3x32x16xf32, #tpu.memory_space<vmem>>, %arg12: memref<1x16xf32, #tpu.memory_space<vmem>>, %arg13: memref<1x8x16xf32, #tpu.memory_space<vmem>>, %arg14: memref<1x8x16xf32, #tpu.memory_space<vmem>>, %arg15: memref<1x8x16xf32, #tpu.memory_space<vmem>>, %arg16: memref<1x1x1xf32, #tpu.memory_space<vmem>>) attributes {dimension_semantics = [#tpu.dimension_semantics<parallel>], iteration_bounds = array<i64: 1>, scalar_prefetch = 0 : i64, scratch_operands = 0 : i64, tpu.core_type = #tpu.core_type<tc>, window_params = [{transform_indices = @transform_0, window_bounds = array<i64: 1, 128, 16>}, {transform_indices = @transform_1, window_bounds = array<i64: 1, 128, 128>}, {transform_indices = @transform_2, window_bounds = array<i64: 1, 24, 128>}, {transform_indices = @transform_3, window_bounds = array<i64: 1, 8, 16>}, {pipeline_mode = #tpu.pipeline_mode<synchronous>, transform_indices = @transform_4, window_bounds = array<i64: 16, 32>}, {pipeline_mode = #tpu.pipeline_mode<synchronous>, transform_indices = @transform_5, window_bounds = array<i64: 1, 32>}, {pipeline_mode = #tpu.pipeline_mode<synchronous>, transform_indices = @transform_6, window_bounds = array<i64: 32, 32>}, {pipeline_mode = #tpu.pipeline_mode<synchronous>, transform_indices = @transform_7, window_bounds = array<i64: 1, 32>}, {pipeline_mode = #tpu.pipeline_mode<synchronous>, transform_indices = @transform_8, window_bounds = array<i64: 3, 32, 16>}, {pipeline_mode = #tpu.pipeline_mode<synchronous>, transform_indices = @transform_9, window_bounds = array<i64: 1, 16>}, {pipeline_mode = #tpu.pipeline_mode<synchronous>, transform_indices = @transform_10, window_bounds = array<i64: 3, 32, 16>}, {pipeline_mode = #tpu.pipeline_mode<synchronous>, transform_indices = @transform_11, window_bounds = array<i64: 1, 16>}, {transform_indices = @transform_12, window_bounds = array<i64: 1, 8, 16>}, {transform_indices = @transform_13, window_bounds = array<i64: 1, 8, 16>}, {transform_indices = @transform_14, window_bounds = array<i64: 1, 8, 16>}, {transform_indices = @transform_15, window_bounds = array<i64: 1, 1, 1>}]} {
    %c0 = arith.constant 0 : index
    %c0_0 = arith.constant 0 : index
    %c0_1 = arith.constant 0 : index
    %0 = vector.load %arg1[%c0, %c0_0, %c0_1] : memref<1x128x16xf32, #tpu.memory_space<vmem>>, vector<1x128x16xf32>
    %1 = vector.shape_cast %0 : vector<1x128x16xf32> to vector<128x16xf32>
    %c0_2 = arith.constant 0 : index
    %c0_3 = arith.constant 0 : index
    %c0_4 = arith.constant 0 : index
    %2 = vector.load %arg2[%c0_2, %c0_3, %c0_4] : memref<1x128x128xf32, #tpu.memory_space<vmem>>, vector<1x128x128xf32>
    %3 = vector.shape_cast %2 : vector<1x128x128xf32> to vector<128x128xf32>
    %c0_5 = arith.constant 0 : index
    %c0_6 = arith.constant 0 : index
    %c0_7 = arith.constant 0 : index
    %4 = vector.load %arg3[%c0_5, %c0_6, %c0_7] : memref<1x24x128xf32, #tpu.memory_space<vmem>>, vector<1x24x128xf32>
    %5 = vector.shape_cast %4 : vector<1x24x128xf32> to vector<24x128xf32>
    %c0_8 = arith.constant 0 : index
    %c0_9 = arith.constant 0 : index
    %c0_10 = arith.constant 0 : index
    %6 = vector.load %arg4[%c0_8, %c0_9, %c0_10] : memref<1x8x16xf32, #tpu.memory_space<vmem>>, vector<1x8x16xf32>
    %7 = vector.shape_cast %6 : vector<1x8x16xf32> to vector<8x16xf32>
    %cst = arith.constant dense<0.000000e+00> : vector<128x16xf32>
    %8 = tpu.matmul %3, %1, %cst {dimension_numbers = #tpu.dot_dimension_numbers<[1], [0], [0], [1], [0, 0, 1, 1], [], []>} : vector<128x128xf32>, vector<128x16xf32>, vector<128x16xf32> -> vector<128x16xf32>
    %c0_11 = arith.constant 0 : index
    %c0_12 = arith.constant 0 : index
    %9 = vector.load %arg5[%c0_11, %c0_12] : memref<16x32xf32, #tpu.memory_space<vmem>>, vector<16x32xf32>
    %cst_13 = arith.constant dense<0.000000e+00> : vector<128x32xf32>
    %10 = tpu.matmul %8, %9, %cst_13 {dimension_numbers = #tpu.dot_dimension_numbers<[1], [0], [0], [1], [0, 0, 1, 1], [], []>} : vector<128x16xf32>, vector<16x32xf32>, vector<128x32xf32> -> vector<128x32xf32>
    %c0_14 = arith.constant 0 : index
    %c0_15 = arith.constant 0 : index
    %11 = vector.load %arg6[%c0_14, %c0_15] : memref<1x32xf32, #tpu.memory_space<vmem>>, vector<1x32xf32>
    %12 = vector.broadcast %11 : vector<1x32xf32> to vector<128x32xf32>
    %13 = arith.addf %10, %12 : vector<128x32xf32>
    %cst_16 = arith.constant 0.000000e+00 : f32
    %14 = vector.broadcast %cst_16 : f32 to vector<128x32xf32>
    %15 = arith.cmpf oge, %13, %14 : vector<128x32xf32>
    %cst_17 = arith.constant 0.00999999977 : f32
    %16 = vector.broadcast %cst_17 : f32 to vector<128x32xf32>
    %17 = arith.mulf %16, %13 : vector<128x32xf32>
    %18 = arith.select %15, %13, %17 : vector<128x32xi1>, vector<128x32xf32>
    %c0_18 = arith.constant 0 : index
    %c0_19 = arith.constant 0 : index
    %19 = vector.load %arg7[%c0_18, %c0_19] : memref<32x32xf32, #tpu.memory_space<vmem>>, vector<32x32xf32>
    %cst_20 = arith.constant dense<0.000000e+00> : vector<128x32xf32>
    %20 = tpu.matmul %18, %19, %cst_20 {dimension_numbers = #tpu.dot_dimension_numbers<[1], [0], [0], [1], [0, 0, 1, 1], [], []>} : vector<128x32xf32>, vector<32x32xf32>, vector<128x32xf32> -> vector<128x32xf32>
    %cst_21 = arith.constant dense<0.000000e+00> : vector<128x32xf32>
    %21 = tpu.matmul %3, %20, %cst_21 {dimension_numbers = #tpu.dot_dimension_numbers<[1], [0], [0], [1], [0, 0, 1, 1], [], []>} : vector<128x128xf32>, vector<128x32xf32>, vector<128x32xf32> -> vector<128x32xf32>
    %c0_22 = arith.constant 0 : index
    %c0_23 = arith.constant 0 : index
    %22 = vector.load %arg8[%c0_22, %c0_23] : memref<1x32xf32, #tpu.memory_space<vmem>>, vector<1x32xf32>
    %23 = vector.broadcast %22 : vector<1x32xf32> to vector<128x32xf32>
    %24 = arith.addf %21, %23 : vector<128x32xf32>
    %cst_24 = arith.constant 0.000000e+00 : f32
    %25 = vector.broadcast %cst_24 : f32 to vector<128x32xf32>
    %26 = arith.cmpf oge, %24, %25 : vector<128x32xf32>
    %cst_25 = arith.constant 0.00999999977 : f32
    %27 = vector.broadcast %cst_25 : f32 to vector<128x32xf32>
    %28 = arith.mulf %27, %24 : vector<128x32xf32>
    %29 = arith.select %26, %24, %28 : vector<128x32xi1>, vector<128x32xf32>
    %cst_26 = arith.constant dense<0.000000e+00> : vector<24x32xf32>
    %30 = tpu.matmul %5, %29, %cst_26 {dimension_numbers = #tpu.dot_dimension_numbers<[1], [0], [0], [1], [0, 0, 1, 1], [], []>} : vector<24x128xf32>, vector<128x32xf32>, vector<24x32xf32> -> vector<24x32xf32>
    %31 = vector.extract_strided_slice %30 {offsets = [0, 0], sizes = [8, 32], strides = [1, 1]} : vector<24x32xf32> to vector<8x32xf32>
    %32 = vector.extract_strided_slice %30 {offsets = [8, 0], sizes = [8, 32], strides = [1, 1]} : vector<24x32xf32> to vector<8x32xf32>
    %33 = vector.extract_strided_slice %30 {offsets = [16, 0], sizes = [8, 32], strides = [1, 1]} : vector<24x32xf32> to vector<8x32xf32>
    %34 = vector.extract_strided_slice %5 {offsets = [16, 0], sizes = [8, 128], strides = [1, 1]} : vector<24x128xf32> to vector<8x128xf32>
    %cst_27 = arith.constant dense<0.000000e+00> : vector<8x16xf32>
    %35 = tpu.matmul %34, %1, %cst_27 {dimension_numbers = #tpu.dot_dimension_numbers<[1], [0], [0], [1], [0, 0, 1, 1], [], []>} : vector<8x128xf32>, vector<128x16xf32>, vector<8x16xf32> -> vector<8x16xf32>
    %c0_28 = arith.constant 0 : index
    %c0_29 = arith.constant 0 : index
    %c0_30 = arith.constant 0 : index
    %36 = vector.load %arg9[%c0_28, %c0_29, %c0_30] : memref<3x32x16xf32, #tpu.memory_space<vmem>>, vector<1x32x16xf32>
    %37 = vector.shape_cast %36 : vector<1x32x16xf32> to vector<32x16xf32>
    %cst_31 = arith.constant dense<0.000000e+00> : vector<8x16xf32>
    %38 = tpu.matmul %31, %37, %cst_31 {dimension_numbers = #tpu.dot_dimension_numbers<[1], [0], [0], [1], [0, 0, 1, 1], [], []>} : vector<8x32xf32>, vector<32x16xf32>, vector<8x16xf32> -> vector<8x16xf32>
    %c1 = arith.constant 1 : index
    %c0_32 = arith.constant 0 : index
    %c0_33 = arith.constant 0 : index
    %39 = vector.load %arg9[%c1, %c0_32, %c0_33] : memref<3x32x16xf32, #tpu.memory_space<vmem>>, vector<1x32x16xf32>
    %40 = vector.shape_cast %39 : vector<1x32x16xf32> to vector<32x16xf32>
    %cst_34 = arith.constant dense<0.000000e+00> : vector<8x16xf32>
    %41 = tpu.matmul %32, %40, %cst_34 {dimension_numbers = #tpu.dot_dimension_numbers<[1], [0], [0], [1], [0, 0, 1, 1], [], []>} : vector<8x32xf32>, vector<32x16xf32>, vector<8x16xf32> -> vector<8x16xf32>
    %42 = arith.addf %38, %41 : vector<8x16xf32>
    %c2 = arith.constant 2 : index
    %c0_35 = arith.constant 0 : index
    %c0_36 = arith.constant 0 : index
    %43 = vector.load %arg9[%c2, %c0_35, %c0_36] : memref<3x32x16xf32, #tpu.memory_space<vmem>>, vector<1x32x16xf32>
    %44 = vector.shape_cast %43 : vector<1x32x16xf32> to vector<32x16xf32>
    %cst_37 = arith.constant dense<0.000000e+00> : vector<8x16xf32>
    %45 = tpu.matmul %33, %44, %cst_37 {dimension_numbers = #tpu.dot_dimension_numbers<[1], [0], [0], [1], [0, 0, 1, 1], [], []>} : vector<8x32xf32>, vector<32x16xf32>, vector<8x16xf32> -> vector<8x16xf32>
    %46 = arith.addf %42, %45 : vector<8x16xf32>
    %c0_38 = arith.constant 0 : index
    %c0_39 = arith.constant 0 : index
    %47 = vector.load %arg10[%c0_38, %c0_39] : memref<1x16xf32, #tpu.memory_space<vmem>>, vector<1x16xf32>
    %48 = vector.broadcast %47 : vector<1x16xf32> to vector<8x16xf32>
    %49 = arith.addf %46, %48 : vector<8x16xf32>
    %c0_40 = arith.constant 0 : index
    %c0_41 = arith.constant 0 : index
    %c0_42 = arith.constant 0 : index
    %50 = vector.load %arg11[%c0_40, %c0_41, %c0_42] : memref<3x32x16xf32, #tpu.memory_space<vmem>>, vector<1x32x16xf32>
    %51 = vector.shape_cast %50 : vector<1x32x16xf32> to vector<32x16xf32>
    %cst_43 = arith.constant dense<0.000000e+00> : vector<8x16xf32>
    %52 = tpu.matmul %31, %51, %cst_43 {dimension_numbers = #tpu.dot_dimension_numbers<[1], [0], [0], [1], [0, 0, 1, 1], [], []>} : vector<8x32xf32>, vector<32x16xf32>, vector<8x16xf32> -> vector<8x16xf32>
    %c1_44 = arith.constant 1 : index
    %c0_45 = arith.constant 0 : index
    %c0_46 = arith.constant 0 : index
    %53 = vector.load %arg11[%c1_44, %c0_45, %c0_46] : memref<3x32x16xf32, #tpu.memory_space<vmem>>, vector<1x32x16xf32>
    %54 = vector.shape_cast %53 : vector<1x32x16xf32> to vector<32x16xf32>
    %cst_47 = arith.constant dense<0.000000e+00> : vector<8x16xf32>
    %55 = tpu.matmul %32, %54, %cst_47 {dimension_numbers = #tpu.dot_dimension_numbers<[1], [0], [0], [1], [0, 0, 1, 1], [], []>} : vector<8x32xf32>, vector<32x16xf32>, vector<8x16xf32> -> vector<8x16xf32>
    %56 = arith.addf %52, %55 : vector<8x16xf32>
    %c2_48 = arith.constant 2 : index
    %c0_49 = arith.constant 0 : index
    %c0_50 = arith.constant 0 : index
    %57 = vector.load %arg11[%c2_48, %c0_49, %c0_50] : memref<3x32x16xf32, #tpu.memory_space<vmem>>, vector<1x32x16xf32>
    %58 = vector.shape_cast %57 : vector<1x32x16xf32> to vector<32x16xf32>
    %cst_51 = arith.constant dense<0.000000e+00> : vector<8x16xf32>
    %59 = tpu.matmul %33, %58, %cst_51 {dimension_numbers = #tpu.dot_dimension_numbers<[1], [0], [0], [1], [0, 0, 1, 1], [], []>} : vector<8x32xf32>, vector<32x16xf32>, vector<8x16xf32> -> vector<8x16xf32>
    %60 = arith.addf %56, %59 : vector<8x16xf32>
    %c0_52 = arith.constant 0 : index
    %c0_53 = arith.constant 0 : index
    %61 = vector.load %arg12[%c0_52, %c0_53] : memref<1x16xf32, #tpu.memory_space<vmem>>, vector<1x16xf32>
    %62 = vector.broadcast %61 : vector<1x16xf32> to vector<8x16xf32>
    %63 = arith.addf %60, %62 : vector<8x16xf32>
    %cst_54 = arith.constant 0.000000e+00 : f32
    %64 = vector.broadcast %cst_54 : f32 to vector<8x16xf32>
    %65 = arith.cmpf oge, %49, %64 : vector<8x16xf32>
    %cst_55 = arith.constant 0.00999999977 : f32
    %66 = vector.broadcast %cst_55 : f32 to vector<8x16xf32>
    %67 = arith.mulf %66, %49 : vector<8x16xf32>
    %68 = arith.select %65, %49, %67 : vector<8x16xi1>, vector<8x16xf32>
    %cst_56 = arith.constant 0.000000e+00 : f32
    %69 = vector.broadcast %cst_56 : f32 to vector<8x16xf32>
    %70 = arith.cmpf oge, %63, %69 : vector<8x16xf32>
    %cst_57 = arith.constant 0.00999999977 : f32
    %71 = vector.broadcast %cst_57 : f32 to vector<8x16xf32>
    %72 = arith.mulf %71, %63 : vector<8x16xf32>
    %73 = arith.select %70, %63, %72 : vector<8x16xi1>, vector<8x16xf32>
    %74 = math.absf %73 : vector<8x16xf32>
    %cst_58 = arith.constant 9.99999971E-10 : f32
    %75 = vector.broadcast %cst_58 : f32 to vector<8x16xf32>
    %76 = arith.addf %74, %75 : vector<8x16xf32>
    %77 = arith.mulf %76, %7 : vector<8x16xf32>
    %78 = arith.addf %68, %77 : vector<8x16xf32>
    %cst_59 = arith.constant -1.000000e+00 : f32
    %cst_60 = arith.constant 1.000000e+00 : f32
    %79 = vector.broadcast %cst_59 : f32 to vector<8x16xf32>
    %80 = arith.maximumf %79, %78 : vector<8x16xf32>
    %81 = vector.broadcast %cst_60 : f32 to vector<8x16xf32>
    %82 = arith.minimumf %81, %80 : vector<8x16xf32>
    %83 = arith.mulf %35, %82 : vector<8x16xf32>
    %cst_61 = arith.constant dense<0.000000e+00> : vector<8xf32>
    %84 = vector.multi_reduction <add>, %83, %cst_61 [1] : vector<8x16xf32> to vector<8xf32>
    %85 = vector.shape_cast %84 : vector<8xf32> to vector<8x1xf32>
    %86 = arith.mulf %35, %35 : vector<8x16xf32>
    %cst_62 = arith.constant dense<0.000000e+00> : vector<8xf32>
    %87 = vector.multi_reduction <add>, %86, %cst_62 [1] : vector<8x16xf32> to vector<8xf32>
    %88 = vector.shape_cast %87 : vector<8xf32> to vector<8x1xf32>
    %89 = math.sqrt %88 : vector<8x1xf32>
    %cst_63 = arith.constant 9.99999993E-9 : f32
    %90 = vector.broadcast %cst_63 : f32 to vector<8x1xf32>
    %91 = arith.maximumf %89, %90 : vector<8x1xf32>
    %92 = arith.mulf %82, %82 : vector<8x16xf32>
    %cst_64 = arith.constant dense<0.000000e+00> : vector<8xf32>
    %93 = vector.multi_reduction <add>, %92, %cst_64 [1] : vector<8x16xf32> to vector<8xf32>
    %94 = vector.shape_cast %93 : vector<8xf32> to vector<8x1xf32>
    %95 = math.sqrt %94 : vector<8x1xf32>
    %cst_65 = arith.constant 9.99999993E-9 : f32
    %96 = vector.broadcast %cst_65 : f32 to vector<8x1xf32>
    %97 = arith.maximumf %95, %96 : vector<8x1xf32>
    %98 = arith.mulf %91, %97 : vector<8x1xf32>
    %99 = arith.divf %85, %98 : vector<8x1xf32>
    %c0_66 = arith.constant 0 : index
    %c0_67 = arith.constant 0 : index
    %c0_68 = arith.constant 0 : index
    %100 = vector.load %arg13[%c0_66, %c0_67, %c0_68] : memref<1x8x16xf32, #tpu.memory_space<vmem>>, vector<1x8x16xf32>
    %101 = vector.shape_cast %100 : vector<1x8x16xf32> to vector<8x16xf32>
    %102 = vector.shape_cast %82 : vector<8x16xf32> to vector<1x8x16xf32>
    tpu.vector_store %arg13[%c0_66, %c0_67, %c0_68], %102 {strides = array<i32>} : memref<1x8x16xf32, #tpu.memory_space<vmem>>, vector<1x8x16xf32>,
    %c0_69 = arith.constant 0 : index
    %c0_70 = arith.constant 0 : index
    %c0_71 = arith.constant 0 : index
    %103 = vector.load %arg14[%c0_69, %c0_70, %c0_71] : memref<1x8x16xf32, #tpu.memory_space<vmem>>, vector<1x8x16xf32>
    %104 = vector.shape_cast %103 : vector<1x8x16xf32> to vector<8x16xf32>
    %105 = vector.shape_cast %68 : vector<8x16xf32> to vector<1x8x16xf32>
    tpu.vector_store %arg14[%c0_69, %c0_70, %c0_71], %105 {strides = array<i32>} : memref<1x8x16xf32, #tpu.memory_space<vmem>>, vector<1x8x16xf32>,
    %c0_72 = arith.constant 0 : index
    %c0_73 = arith.constant 0 : index
    %c0_74 = arith.constant 0 : index
    %106 = vector.load %arg15[%c0_72, %c0_73, %c0_74] : memref<1x8x16xf32, #tpu.memory_space<vmem>>, vector<1x8x16xf32>
    %107 = vector.shape_cast %106 : vector<1x8x16xf32> to vector<8x16xf32>
    %108 = vector.shape_cast %76 : vector<8x16xf32> to vector<1x8x16xf32>
    tpu.vector_store %arg15[%c0_72, %c0_73, %c0_74], %108 {strides = array<i32>} : memref<1x8x16xf32, #tpu.memory_space<vmem>>, vector<1x8x16xf32>,
    %cst_75 = arith.constant dense<0.000000e+00> : vector<1xf32>
    %109 = vector.multi_reduction <add>, %99, %cst_75 [0] : vector<8x1xf32> to vector<1xf32>
    %110 = vector.shape_cast %109 : vector<1xf32> to vector<1x1xf32>
    %c0_76 = arith.constant 0 : index
    %c0_77 = arith.constant 0 : index
    %c0_78 = arith.constant 0 : index
    %111 = vector.load %arg16[%c0_76, %c0_77, %c0_78] : memref<1x1x1xf32, #tpu.memory_space<vmem>>, vector<1x1x1xf32>
    %112 = vector.shape_cast %111 : vector<1x1x1xf32> to vector<1x1xf32>
    %113 = vector.shape_cast %110 : vector<1x1xf32> to vector<1x1x1xf32>
    tpu.vector_store %arg16[%c0_76, %c0_77, %c0_78], %113 {strides = array<i32>} : memref<1x1x1xf32, #tpu.memory_space<vmem>>, vector<1x1x1xf32>,
    return
  }
  func.func @transform_0(%arg0: i32) -> (i32, i32, i32) {
    %c0_i32 = arith.constant 0 : i32
    %c0_i32_0 = arith.constant 0 : i32
    %c0_i32_1 = arith.constant 0 : i32
    return %arg0, %c0_i32, %c0_i32_0 : i32, i32, i32
  }
  func.func @transform_1(%arg0: i32) -> (i32, i32, i32) {
    %c0_i32 = arith.constant 0 : i32
    %c0_i32_0 = arith.constant 0 : i32
    %c0_i32_1 = arith.constant 0 : i32
    return %arg0, %c0_i32, %c0_i32_0 : i32, i32, i32
  }
  func.func @transform_2(%arg0: i32) -> (i32, i32, i32) {
    %c0_i32 = arith.constant 0 : i32
    %c0_i32_0 = arith.constant 0 : i32
    %c0_i32_1 = arith.constant 0 : i32
    return %arg0, %c0_i32, %c0_i32_0 : i32, i32, i32
  }
  func.func @transform_3(%arg0: i32) -> (i32, i32, i32) {
    %c0_i32 = arith.constant 0 : i32
    %c0_i32_0 = arith.constant 0 : i32
    %c0_i32_1 = arith.constant 0 : i32
    return %arg0, %c0_i32, %c0_i32_0 : i32, i32, i32
  }
  func.func @transform_4(%arg0: i32) -> (i32, i32) {
    %c0_i32 = arith.constant 0 : i32
    %c0_i32_0 = arith.constant 0 : i32
    %c0_i32_1 = arith.constant 0 : i32
    return %c0_i32, %c0_i32_0 : i32, i32
  }
  func.func @transform_5(%arg0: i32) -> (i32, i32) {
    %c0_i32 = arith.constant 0 : i32
    %c0_i32_0 = arith.constant 0 : i32
    %c0_i32_1 = arith.constant 0 : i32
    return %c0_i32, %c0_i32_0 : i32, i32
  }
  func.func @transform_6(%arg0: i32) -> (i32, i32) {
    %c0_i32 = arith.constant 0 : i32
    %c0_i32_0 = arith.constant 0 : i32
    %c0_i32_1 = arith.constant 0 : i32
    return %c0_i32, %c0_i32_0 : i32, i32
  }
  func.func @transform_7(%arg0: i32) -> (i32, i32) {
    %c0_i32 = arith.constant 0 : i32
    %c0_i32_0 = arith.constant 0 : i32
    %c0_i32_1 = arith.constant 0 : i32
    return %c0_i32, %c0_i32_0 : i32, i32
  }
  func.func @transform_8(%arg0: i32) -> (i32, i32, i32) {
    %c0_i32 = arith.constant 0 : i32
    %c0_i32_0 = arith.constant 0 : i32
    %c0_i32_1 = arith.constant 0 : i32
    %c0_i32_2 = arith.constant 0 : i32
    return %c0_i32, %c0_i32_0, %c0_i32_1 : i32, i32, i32
  }
  func.func @transform_9(%arg0: i32) -> (i32, i32) {
    %c0_i32 = arith.constant 0 : i32
    %c0_i32_0 = arith.constant 0 : i32
    %c0_i32_1 = arith.constant 0 : i32
    return %c0_i32, %c0_i32_0 : i32, i32
  }
  func.func @transform_10(%arg0: i32) -> (i32, i32, i32) {
    %c0_i32 = arith.constant 0 : i32
    %c0_i32_0 = arith.constant 0 : i32
    %c0_i32_1 = arith.constant 0 : i32
    %c0_i32_2 = arith.constant 0 : i32
    return %c0_i32, %c0_i32_0, %c0_i32_1 : i32, i32, i32
  }
  func.func @transform_11(%arg0: i32) -> (i32, i32) {
    %c0_i32 = arith.constant 0 : i32
    %c0_i32_0 = arith.constant 0 : i32
    %c0_i32_1 = arith.constant 0 : i32
    return %c0_i32, %c0_i32_0 : i32, i32
  }
  func.func @transform_12(%arg0: i32) -> (i32, i32, i32) {
    %c0_i32 = arith.constant 0 : i32
    %c0_i32_0 = arith.constant 0 : i32
    %c0_i32_1 = arith.constant 0 : i32
    return %arg0, %c0_i32, %c0_i32_0 : i32, i32, i32
  }
  func.func @transform_13(%arg0: i32) -> (i32, i32, i32) {
    %c0_i32 = arith.constant 0 : i32
    %c0_i32_0 = arith.constant 0 : i32
    %c0_i32_1 = arith.constant 0 : i32
    return %arg0, %c0_i32, %c0_i32_0 : i32, i32, i32
  }
  func.func @transform_14(%arg0: i32) -> (i32, i32, i32) {
    %c0_i32 = arith.constant 0 : i32
    %c0_i32_0 = arith.constant 0 : i32
    %c0_i32_1 = arith.constant 0 : i32
    return %arg0, %c0_i32, %c0_i32_0 : i32, i32, i32
  }
  func.func @transform_15(%arg0: i32) -> (i32, i32, i32) {
    %c0_i32 = arith.constant 0 : i32
    %c0_i32_0 = arith.constant 0 : i32
    %c0_i32_1 = arith.constant 0 : i32
    return %arg0, %c0_i32, %c0_i32_0 : i32, i32, i32
  }
}

</mosaic_0001>

<bundles_post_ra>
// kernel: tpu_custom_call.1
= control target key start
LH: loop header
LB: loop body
LE: loop exit
PB: predicated region body
PF: predicated region fallthrough
CT: control target
= control target key end

     0   :  { %21 = vsyncpa [#allocation3], 0  ;;  %s3006_s0 = inlined_call_operand.vmem [shape: f32[1,128,16], index: 0, kind: input, shape index: {}]   ;;  %s3007_s1 = inlined_call_operand.vmem [shape: f32[1,128,128], index: 1, kind: input, shape index: {}]   ;;  %s3008_s2 = inlined_call_operand.vmem [shape: f32[1,24,128], index: 2, kind: input, shape index: {}]   ;;  %s3009_s3 = inlined_call_operand.vmem [shape: f32[1,8,16], index: 3, kind: input, shape index: {}]   ;;  %s3010_s4 = inlined_call_operand.vmem [shape: f32[16,32], index: 4, kind: input, shape index: {}]   ;;  %s3011_s5 = inlined_call_operand.vmem [shape: f32[1,32], index: 5, kind: input, shape index: {}]   ;;  %s3012_s6 = inlined_call_operand.vmem [shape: f32[32,32], index: 6, kind: input, shape index: {}]   ;;  %s3013_s7 = inlined_call_operand.vmem [shape: f32[1,32], index: 7, kind: input, shape index: {}]   ;;  %s3014_s8 = inlined_call_operand.vmem [shape: f32[3,32,16], index: 8, kind: input, shape index: {}]   ;;  %s3015_s9 = inlined_call_operand.vmem [shape: f32[1,16], index: 9, kind: input, shape index: {}]   ;;  %s3016_s10 = inlined_call_operand.vmem [shape: f32[3,32,16], index: 10, kind: input, shape index: {}]   ;;  %s3017_s11 = inlined_call_operand.vmem [shape: f32[1,16], index: 11, kind: input, shape index: {}]   ;;  %s3018_s12 = inlined_call_operand.hbm [shape: f32[1,8,16], index: 12, kind: output, shape index: {0}]   ;;  %s3019_s13 = inlined_call_operand.hbm [shape: f32[1,8,16], index: 13, kind: output, shape index: {1}]   ;;  %s3020_s14 = inlined_call_operand.hbm [shape: f32[1,8,16], index: 14, kind: output, shape index: {2}]   ;;  %s3021_s15 = inlined_call_operand.hbm [shape: f32[1,1,1], index: 15, kind: output, shape index: {3}]  }
   0x1   :  { %22 = vsyncpa [#allocation5], 0  ;;  %v48_v0 = vld [vmem:[%s3006_s0] sm:$0xff]  ;;  %v49_v1 = vld [vmem:[%s3006_s0 + $0x8] sm:$0xff] }
   0x2   :  { %v50_v2 = vld [vmem:[%s3006_s0 + $0x10] sm:$0xff]  ;;  %v2516_v3 = vpack.c.bf16 %v49_v1, %v48_v0  ;;  %v51_v4 = vld [vmem:[%s3006_s0 + $0x18] sm:$0xff]  ;;  %v52_v6 = vld [vmem:[%s3006_s0 + $0x20] sm:$0xff] }
   0x3   :  { %v2521_v5 = vpack.c.bf16 %v51_v4, %v50_v2  ;;  %v53_v7 = vld [vmem:[%s3006_s0 + $0x28] sm:$0xff]  ;;  %v2537_v9 = vld [vmem:[%s3007_s1] sm:$0xff]  ;;  %v54_v10 = vld [vmem:[%s3006_s0 + $0x30] sm:$0xff] }
   0x4   :  { %2154 = vmatprep.subr.bf16.mxu0 %v2516_v3  ;;  %v2532_v8 = vpack.c.bf16 %v53_v7, %v52_v6  ;;  %v55_v11 = vld [vmem:[%s3006_s0 + $0x38] sm:$0xff]  ;;  %1871 = vmatprep.mubr.f32.mxu0 %v2537_v9  ;;  %v56_v13 = vld [vmem:[%s3006_s0 + $0x40] sm:$0xff]  ;;  %v57_v14 = vld [vmem:[%s3006_s0 + $0x48] sm:$0xff] }
   0x5   :  { %2156 = vmatpush3.bf16.msra.mxu0 %v2516_v3  ;;  %v2548_v12 = vpack.c.bf16 %v55_v11, %v54_v10  ;;  %v229_v15 = vld [vmem:[%s3010_s4] sm:$0xff]  ;;  %v230_v16 = vld [vmem:[%s3010_s4 + $0x8] sm:$0xff] }
   0x6   :  { %2158 = vmatprep.subr.bf16.mxu0 %v2521_v5 }
   0x9   :  { %2160 = vmatpush3.bf16.msra.mxu0 %v2521_v5 }
   0xa   :  { %2162 = vmatprep.subr.bf16.mxu0 %v2532_v8 }
   0xb   :  { %23 = vsyncpa [#allocation8], 0  ;;  %v2185_v17 = vpack.c.bf16 %v230_v16, %v229_v15  ;;  %v2564_v18 = vpack.c.bf16 %v57_v14, %v56_v13  ;;  %v58_v19 = vld [vmem:[%s3006_s0 + $0x50] sm:$0xff]  ;;  %v59_v20 = vld [vmem:[%s3006_s0 + $0x58] sm:$0xff]  ;;  %vm238_vm0 = vcmask 130048   ;;  %vm484_vm3 = vcmask 261120  }
   0xc   :  { %v2574_v21 = vpack.c.bf16 %v59_v20, %v58_v19  ;;  %v60_v22 = vld [vmem:[%s3006_s0 + $0x60] sm:$0xff]  ;;  %v61_v23 = vld [vmem:[%s3006_s0 + $0x68] sm:$0xff]  ;;  %v62_v25 = vld [vmem:[%s3006_s0 + $0x70] sm:$0xff] }
   0xd   :  { %2164 = vmatpush3.bf16.msra.mxu0 %v2532_v8  ;;  %2186 = vmatprep.subr.bf16.mxu1 %v2185_v17  ;;  %v2584_v24 = vpack.c.bf16 %v61_v23, %v60_v22  ;;  %v63_v26 = vld [vmem:[%s3006_s0 + $0x78] sm:$0xff]  ;;  %v2602_v28 = vld [vmem:[%s3007_s1 + $0x8] sm:$0xff]  ;;  %v2607_v29 = vld [vmem:[%s3007_s1 + $0x10] sm:$0xff] }
   0xe   :  { %2166 = vmatprep.subr.bf16.mxu0 %v2548_v12  ;;  %2188 = vmatpush3.bf16.msra.mxu1 %v2185_v17  ;;  %v2594_v27 = vpack.c.bf16 %v63_v26, %v62_v25  ;;  %v2614_v30 = vld [vmem:[%s3007_s1 + $0x18] sm:$0xff]  ;;  %v2619_v31 = vld [vmem:[%s3007_s1 + $0x20] sm:$0xff]  ;;  %v2626_v32 = vld [vmem:[%s3007_s1 + $0x28] sm:$0xff] }
   0xf   :  { %v2631_v33 = vld [vmem:[%s3007_s1 + $0x30] sm:$0xff]  ;;  %v2638_v34 = vld [vmem:[%s3007_s1 + $0x38] sm:$0xff]  ;;  %v2643_v35 = vld [vmem:[%s3007_s1 + $0x40] sm:$0xff] }
  0x10   :  { %v2650_v36 = vld [vmem:[%s3007_s1 + $0x48] sm:$0xff]  ;;  %v2655_v37 = vld [vmem:[%s3007_s1 + $0x50] sm:$0xff]  ;;  %v2662_v38 = vld [vmem:[%s3007_s1 + $0x58] sm:$0xff] }
  0x11   :  { %2168 = vmatpush3.bf16.msra.mxu0 %v2548_v12  ;;  %v2667_v39 = vld [vmem:[%s3007_s1 + $0x60] sm:$0xff]  ;;  %v2674_v40 = vld [vmem:[%s3007_s1 + $0x68] sm:$0xff]  ;;  %v2679_v41 = vld [vmem:[%s3007_s1 + $0x70] sm:$0xff] }
  0x12   :  { %2170 = vmatprep.subr.bf16.mxu0 %v2564_v18  ;;  %v2686_v42 = vld [vmem:[%s3007_s1 + $0x78] sm:$0xff]  ;;  %v480_v43 = vld [vmem:[%s3012_s6] sm:$0xff]  ;;  %v481_v44 = vld [vmem:[%s3012_s6 + $0x8] sm:$0xff] }
  0x13   :  { %v2189_v45 = vpack.c.bf16 %v481_v44, %v480_v43  ;;  %v482_v46 = vld [vmem:[%s3012_s6 + $0x10] sm:$0xff]  ;;  %v483_v47 = vld [vmem:[%s3012_s6 + $0x18] sm:$0xff]  ;;  %v2721_v1 = vld [vmem:[%s3011_s5] ss:$0 sm:$0xff] }
  0x14   :  { %v2193_v50 = vpack.c.bf16 %v483_v47, %v482_v46 }
  0x15   :  { %2172 = vmatpush3.bf16.msra.mxu0 %v2564_v18  ;;  %2190 = vmatprep.subr.bf16.mxu1 %v2189_v45 }
  0x16   :  { %2174 = vmatprep.subr.bf16.mxu0 %v2574_v21 }
  0x19   :  { %2176 = vmatpush3.bf16.msra.mxu0 %v2574_v21 }
  0x1a   :  { %2178 = vmatprep.subr.bf16.mxu0 %v2584_v24 }
  0x1d   :  { %2180 = vmatpush3.bf16.msra.mxu0 %v2584_v24 }
  0x1e   :  { %2182 = vmatprep.subr.bf16.mxu0 %v2594_v27 }
  0x21   :  { %2184 = vmatpush3.bf16.msra.mxu0 %v2594_v27 }
  0x24   :  { %1872 = vmatmul.mubr.f32.vlgmr.msra.gmra.mrb[0].mxu0 %v2602_v28 }
  0x25   :  { %1874 = vmatprep.mubr.f32.mxu0 %v2607_v29 }
  0x28   :  { %1875 = vmatmul.mubr.f32.gmra.mrb[2].mxu0 %v2614_v30 }
  0x29   :  { %1877 = vmatprep.mubr.f32.mxu0 %v2619_v31 }
  0x2c   :  { %1878 = vmatmul.mubr.f32.gmra.mrb[4].mxu0 %v2626_v32 }
  0x2d   :  { %1880 = vmatprep.mubr.f32.mxu0 %v2631_v33 }
  0x30   :  { %1881 = vmatmul.mubr.f32.gmra.mrb[6].mxu0 %v2638_v34 }
  0x31   :  { %1883 = vmatprep.mubr.f32.mxu0 %v2643_v35 }
  0x34   :  { %1884 = vmatmul.mubr.f32.gmra.mrb[8].mxu0 %v2650_v36 }
  0x35   :  { %1886 = vmatprep.mubr.f32.mxu0 %v2655_v37 }
  0x38   :  { %1887 = vmatmul.mubr.f32.gmra.mrb[10].mxu0 %v2662_v38 }
  0x39   :  { %1889 = vmatprep.mubr.f32.mxu0 %v2667_v39 }
  0x3c   :  { %1890 = vmatmul.mubr.f32.gmra.mrb[12].mxu0 %v2674_v40 }
  0x3d   :  { %1892 = vmatprep.mubr.f32.mxu0 %v2679_v41 }
  0x40   :  { %1893 = vmatmul.mubr.f32.gmra.mrb[14].mxu0 %v2686_v42 }
  0x41   :  { %1987 = vmatprep.mubr.f32.mxu0 %v2537_v9 }
  0xf7   :  { %v1873_v48 = vpop.f32.mrb[0].mxu0 }
  0xf8   :  { %v150_v49 = vpop.f32.mrb[1].mxu0 }
  0xf9   :  { %1899 = vmatprep.mubr.msk.f32.mxu1 %vm238_vm0, %v150_v49 }
  0xfa   :  { %1900 = vmatmul.mubr.msk.f32.vlgmr.msra.gmra.mrb[0].mxu1 %vm238_vm0, %v1873_v48 }
  0xfb   :  { %v1876_v51 = vpop.f32.mrb[2].mxu0  ;;  %2192 = vmatpush3.bf16.msra.mxu1 %v2189_v45 }
  0xfc   :  { %v160_v52 = vpop.f32.mrb[3].mxu0  ;;  %2194 = vmatprep.subr.bf16.mxu1 %v2193_v50 }
  0xfd   :  { %1902 = vmatprep.mubr.msk.f32.mxu1 %vm238_vm0, %v160_v52 }
  0xfe   :  { %1903 = vmatmul.mubr.msk.f32.gmra.mrb[2].mxu1 %vm238_vm0, %v1876_v51 }
  0xff   :  { %v1879_v53 = vpop.f32.mrb[4].mxu0  ;;  %2196 = vmatpush3.bf16.msra.mxu1 %v2193_v50 }
 0x100   :  { %v170_v54 = vpop.f32.mrb[5].mxu0 }
 0x101   :  { %1905 = vmatprep.mubr.msk.f32.mxu1 %vm238_vm0, %v170_v54 }
 0x102   :  { %1906 = vmatmul.mubr.msk.f32.gmra.mrb[4].mxu1 %vm238_vm0, %v1879_v53 }
 0x103   :  { %v1882_v55 = vpop.f32.mrb[6].mxu0 }
 0x104   :  { %v180_v56 = vpop.f32.mrb[7].mxu0 }
 0x105   :  { %1908 = vmatprep.mubr.msk.f32.mxu1 %vm238_vm0, %v180_v56 }
 0x106   :  { %1909 = vmatmul.mubr.msk.f32.gmra.mrb[6].mxu1 %vm238_vm0, %v1882_v55 }
 0x107   :  { %v1885_v57 = vpop.f32.mrb[8].mxu0 }
 0x108   :  { %v190_v58 = vpop.f32.mrb[9].mxu0 }
 0x109   :  { %1911 = vmatprep.mubr.msk.f32.mxu1 %vm238_vm0, %v190_v58 }
 0x10a   :  { %1912 = vmatmul.mubr.msk.f32.gmra.mrb[8].mxu1 %vm238_vm0, %v1885_v57 }
 0x10b   :  { %v1888_v59 = vpop.f32.mrb[10].mxu0 }
 0x10c   :  { %v200_v60 = vpop.f32.mrb[11].mxu0 }
 0x10d   :  { %1914 = vmatprep.mubr.msk.f32.mxu1 %vm238_vm0, %v200_v60 }
 0x10e   :  { %1915 = vmatmul.mubr.msk.f32.gmra.mrb[10].mxu1 %vm238_vm0, %v1888_v59 }
 0x10f   :  { %v1891_v61 = vpop.f32.mrb[12].mxu0 }
 0x110   :  { %v210_v62 = vpop.f32.mrb[13].mxu0 }
 0x111   :  { %1917 = vmatprep.mubr.msk.f32.mxu1 %vm238_vm0, %v210_v62 }
 0x112   :  { %1918 = vmatmul.mubr.msk.f32.gmra.mrb[12].mxu1 %vm238_vm0, %v1891_v61 }
 0x113   :  { %v1894_v63 = vpop.f32.mrb[14].mxu0 }
 0x114   :  { %v220_v0 = vpop.f32.mrb[15].mxu0 }
 0x115   :  { %1920 = vmatprep.mubr.msk.f32.mxu1 %vm238_vm0, %v220_v0 }
 0x116   :  { %1921 = vmatmul.mubr.msk.f32.gmra.mrb[14].mxu1 %vm238_vm0, %v1894_v63 }
 0x1cd   :  { %v1901_v2 = vpop.f32.mrb[0].mxu1 }
 0x1ce   :  { %v359_v4 = vadd.f32 %v1901_v2, %v2721_v1  ;;  %v353_v6 = vpop.f32.mrb[1].mxu1 }
 0x1cf   :  { %v354_v7 = vadd.f32 %v2721_v1, %v353_v6 }
 0x1d0   :  { %v449_v9 = vmul.f32 0.01, %v359_v4  ;;  %vm433_vm1 = vcmp.ge.f32.partialorder %v359_v4, 0.0 }
 0x1d1   :  { %vm432_vm2 = vcmp.ge.f32.partialorder %v354_v7, 0.0  ;;  %v448_v10 = vmul.f32 0.01, %v354_v7  ;;  %v1904_v11 = vpop.f32.mrb[2].mxu1 }
 0x1d2   :  { %v369_v13 = vadd.f32 %v1904_v11, %v2721_v1  ;;  %v363_v14 = vpop.f32.mrb[3].mxu1  ;;  %v465_v17 = vsel %vm433_vm1, %v359_v4, %v449_v9 }
 0x1d3   :  { %v364_v15 = vadd.f32 %v2721_v1, %v363_v14  ;;  %v464_v16 = vsel %vm432_vm2, %v354_v7, %v448_v10 }
 0x1d4   :  { %v451_v19 = vmul.f32 0.01, %v369_v13  ;;  %1931 = vmatprep.mubr.msk.f32.mxu1 %vm484_vm3, %v464_v16  ;;  %vm435_vm4 = vcmp.ge.f32.partialorder %v369_v13, 0.0 }
 0x1d5   :  { %vm434_vm5 = vcmp.ge.f32.partialorder %v364_v15, 0.0  ;;  %v450_v20 = vmul.f32 0.01, %v364_v15  ;;  %v1907_v22 = vpop.f32.mrb[4].mxu1  ;;  %1932 = vmatmul.mubr.msk.f32.vlgmr.msra.gmra.mrb[16].mxu1 %vm484_vm3, %v465_v17 }
 0x1d6   :  { %v379_v23 = vadd.f32 %v1907_v22, %v2721_v1  ;;  %v373_v25 = vpop.f32.mrb[5].mxu1  ;;  %v467_v45 = vsel %vm435_vm4, %v369_v13, %v451_v19  ;;  %vm2421_vm4 = vmmov 0  }
 0x1d7   :  { %v374_v26 = vadd.f32 %v2721_v1, %v373_v25  ;;  %v466_v43 = vsel %vm434_vm5, %v364_v15, %v450_v20 }
 0x1d8   :  { %v453_v44 = vmul.f32 0.01, %v379_v23  ;;  %1934 = vmatprep.mubr.msk.f32.mxu1 %vm484_vm3, %v466_v43  ;;  %vm437_vm6 = vcmp.ge.f32.partialorder %v379_v23, 0.0 }
 0x1d9   :  { %vm436_vm7 = vcmp.ge.f32.partialorder %v374_v26, 0.0  ;;  %v452_v46 = vmul.f32 0.01, %v374_v26  ;;  %v1910_v47 = vpop.f32.mrb[6].mxu1  ;;  %1935 = vmatmul.mubr.msk.f32.gmra.mrb[18].mxu1 %vm484_vm3, %v467_v45 }
 0x1da   :  { %v389_v48 = vadd.f32 %v1910_v47, %v2721_v1  ;;  %v383_v49 = vpop.f32.mrb[7].mxu1  ;;  %v469_v53 = vsel %vm437_vm6, %v379_v23, %v453_v44 }
 0x1db   :  { %v384_v50 = vadd.f32 %v2721_v1, %v383_v49  ;;  %v468_v51 = vsel %vm436_vm7, %v374_v26, %v452_v46 }
 0x1dc   :  { %v455_v52 = vmul.f32 0.01, %v389_v48  ;;  %1937 = vmatprep.mubr.msk.f32.mxu1 %vm484_vm3, %v468_v51  ;;  %vm439_vm8 = vcmp.ge.f32.partialorder %v389_v48, 0.0 }
 0x1dd   :  { %vm438_vm9 = vcmp.ge.f32.partialorder %v384_v50, 0.0  ;;  %v454_v54 = vmul.f32 0.01, %v384_v50  ;;  %v1913_v55 = vpop.f32.mrb[8].mxu1  ;;  %1938 = vmatmul.mubr.msk.f32.gmra.mrb[20].mxu1 %vm484_vm3, %v469_v53 }
 0x1de   :  { %v399_v56 = vadd.f32 %v1913_v55, %v2721_v1  ;;  %v393_v57 = vpop.f32.mrb[9].mxu1  ;;  %v471_v61 = vsel %vm439_vm8, %v389_v48, %v455_v52 }
 0x1df   :  { %v394_v58 = vadd.f32 %v2721_v1, %v393_v57  ;;  %v470_v59 = vsel %vm438_vm9, %v384_v50, %v454_v54 }
 0x1e0   :  { %v457_v60 = vmul.f32 0.01, %v399_v56  ;;  %1940 = vmatprep.mubr.msk.f32.mxu1 %vm484_vm3, %v470_v59  ;;  %vm441_vm10 = vcmp.ge.f32.partialorder %v399_v56, 0.0 }
 0x1e1   :  { %vm440_vm11 = vcmp.ge.f32.partialorder %v394_v58, 0.0  ;;  %v456_v62 = vmul.f32 0.01, %v394_v58  ;;  %v1916_v63 = vpop.f32.mrb[10].mxu1  ;;  %1941 = vmatmul.mubr.msk.f32.gmra.mrb[22].mxu1 %vm484_vm3, %v471_v61 }
 0x1e2   :  { %v409_v0 = vadd.f32 %v1916_v63, %v2721_v1  ;;  %v403_v2 = vpop.f32.mrb[11].mxu1  ;;  %v473_v9 = vsel %vm441_vm10, %v399_v56, %v457_v60 }
 0x1e3   :  { %v404_v4 = vadd.f32 %v2721_v1, %v403_v2  ;;  %v472_v6 = vsel %vm440_vm11, %v394_v58, %v456_v62 }
 0x1e4   :  { %v459_v7 = vmul.f32 0.01, %v409_v0  ;;  %1943 = vmatprep.mubr.msk.f32.mxu1 %vm484_vm3, %v472_v6  ;;  %vm443_vm12 = vcmp.ge.f32.partialorder %v409_v0, 0.0 }
 0x1e5   :  { %vm442_vm13 = vcmp.ge.f32.partialorder %v404_v4, 0.0  ;;  %v458_v10 = vmul.f32 0.01, %v404_v4  ;;  %v1919_v11 = vpop.f32.mrb[12].mxu1  ;;  %1944 = vmatmul.mubr.msk.f32.gmra.mrb[24].mxu1 %vm484_vm3, %v473_v9 }
 0x1e6   :  { %v419_v13 = vadd.f32 %v1919_v11, %v2721_v1  ;;  %v413_v14 = vpop.f32.mrb[13].mxu1  ;;  %v475_v19 = vsel %vm443_vm12, %v409_v0, %v459_v7 }
 0x1e7   :  { %v414_v15 = vadd.f32 %v2721_v1, %v413_v14  ;;  %v474_v16 = vsel %vm442_vm13, %v404_v4, %v458_v10 }
 0x1e8   :  { %v461_v17 = vmul.f32 0.01, %v419_v13  ;;  %1946 = vmatprep.mubr.msk.f32.mxu1 %vm484_vm3, %v474_v16  ;;  %vm445_vm14 = vcmp.ge.f32.partialorder %v419_v13, 0.0 }
 0x1e9   :  { %vm444_vm15 = vcmp.ge.f32.partialorder %v414_v15, 0.0  ;;  %v460_v20 = vmul.f32 0.01, %v414_v15  ;;  %v1922_v22 = vpop.f32.mrb[14].mxu1  ;;  %1947 = vmatmul.mubr.msk.f32.gmra.mrb[26].mxu1 %vm484_vm3, %v475_v19 }
 0x1ea   :  { %v429_v23 = vadd.f32 %v1922_v22, %v2721_v1  ;;  %v423_v25 = vpop.f32.mrb[15].mxu1  ;;  %v477_v45 = vsel %vm445_vm14, %v419_v13, %v461_v17 }
 0x1eb   :  { %v424_v26 = vadd.f32 %v2721_v1, %v423_v25  ;;  %v476_v43 = vsel %vm444_vm15, %v414_v15, %v460_v20 }
 0x1ec   :  { %v463_v44 = vmul.f32 0.01, %v429_v23  ;;  %1949 = vmatprep.mubr.msk.f32.mxu1 %vm484_vm3, %v476_v43  ;;  %vm447_vm1 = vcmp.ge.f32.partialorder %v429_v23, 0.0 }
 0x1ed   :  { %vm446_vm2 = vcmp.ge.f32.partialorder %v424_v26, 0.0  ;;  %v462_v46 = vmul.f32 0.01, %v424_v26  ;;  %1950 = vmatmul.mubr.msk.f32.gmra.mrb[28].mxu1 %vm484_vm3, %v477_v45 }
 0x1ee   :  { %v479_v48 = vsel %vm447_vm1, %v429_v23, %v463_v44 }
 0x1ef   :  { %v478_v47 = vsel %vm446_vm2, %v424_v26, %v462_v46 }
 0x1f0   :  { %1952 = vmatprep.mubr.msk.f32.mxu1 %vm484_vm3, %v478_v47 }
 0x1f1   :  { %1953 = vmatmul.mubr.msk.f32.gmra.mrb[30].mxu1 %vm484_vm3, %v479_v48 }
 0x2a8   :  { %v1933_v49 = vpop.f32.mrb[16].mxu1 }
 0x2a9   :  { %v599_v50 = vpop.f32.mrb[17].mxu1 }
 0x2aa   :  { %v2197_v51 = vpack.c.bf16 %v1933_v49, %v599_v50 }
 0x2ac   :  { %v1936_v1 = vpop.f32.mrb[18].mxu1  ;;  %2198 = vmatprep.subr.bf16.mxu0 %v2197_v51 }
 0x2ad   :  { %v609_v52 = vpop.f32.mrb[19].mxu1  ;;  %2200 = vmatpush3.bf16.msra.mxu0 %v2197_v51 }
 0x2ae   :  { %v2201_v53 = vpack.c.bf16 %v1936_v1, %v609_v52 }
 0x2b0   :  { %v1939_v54 = vpop.f32.mrb[20].mxu1  ;;  %2202 = vmatprep.subr.bf16.mxu0 %v2201_v53 }
 0x2b1   :  { %v619_v55 = vpop.f32.mrb[21].mxu1  ;;  %2204 = vmatpush3.bf16.msra.mxu0 %v2201_v53 }
 0x2b2   :  { %v2205_v56 = vpack.c.bf16 %v1939_v54, %v619_v55 }
 0x2b4   :  { %v1942_v57 = vpop.f32.mrb[22].mxu1  ;;  %2206 = vmatprep.subr.bf16.mxu0 %v2205_v56 }
 0x2b5   :  { %v629_v58 = vpop.f32.mrb[23].mxu1  ;;  %2208 = vmatpush3.bf16.msra.mxu0 %v2205_v56 }
 0x2b6   :  { %v2209_v59 = vpack.c.bf16 %v1942_v57, %v629_v58 }
 0x2b8   :  { %v1945_v60 = vpop.f32.mrb[24].mxu1  ;;  %2210 = vmatprep.subr.bf16.mxu0 %v2209_v59 }
 0x2b9   :  { %v639_v61 = vpop.f32.mrb[25].mxu1  ;;  %2212 = vmatpush3.bf16.msra.mxu0 %v2209_v59 }
 0x2ba   :  { %v2213_v62 = vpack.c.bf16 %v1945_v60, %v639_v61 }
 0x2bc   :  { %v1948_v63 = vpop.f32.mrb[26].mxu1  ;;  %2214 = vmatprep.subr.bf16.mxu0 %v2213_v62 }
 0x2bd   :  { %v649_v0 = vpop.f32.mrb[27].mxu1  ;;  %2216 = vmatpush3.bf16.msra.mxu0 %v2213_v62 }
 0x2be   :  { %v2217_v2 = vpack.c.bf16 %v1948_v63, %v649_v0 }
 0x2c0   :  { %v1951_v4 = vpop.f32.mrb[28].mxu1  ;;  %2218 = vmatprep.subr.bf16.mxu0 %v2217_v2 }
 0x2c1   :  { %v659_v6 = vpop.f32.mrb[29].mxu1  ;;  %2220 = vmatpush3.bf16.msra.mxu0 %v2217_v2 }
 0x2c2   :  { %v2221_v7 = vpack.c.bf16 %v1951_v4, %v659_v6 }
 0x2c4   :  { %v1954_v9 = vpop.f32.mrb[30].mxu1  ;;  %2222 = vmatprep.subr.bf16.mxu0 %v2221_v7 }
 0x2c5   :  { %v669_v10 = vpop.f32.mrb[31].mxu1  ;;  %2224 = vmatpush3.bf16.msra.mxu0 %v2221_v7 }
 0x2c6   :  { %v2225_v11 = vpack.c.bf16 %v1954_v9, %v669_v10 }
 0x2c8   :  { %2226 = vmatprep.subr.bf16.mxu0 %v2225_v11 }
 0x2c9   :  { %2228 = vmatpush3.bf16.msra.mxu0 %v2225_v11 }
 0x2cc   :  { %1988 = vmatmul.mubr.f32.vlgmr.msra.gmra.mrb[16].mxu0 %v2602_v28  ;;  %v2420_v28 = vmov 0.0|0.0  }
 0x2cd   :  { %1990 = vmatprep.mubr.f32.mxu0 %v2607_v29  ;;  %2229 = vmatprep.subr.bf16.mxu1 %v2420_v28 }
 0x2ce   :  { %2253 = vmatprep.subr.bf16.mxu0 %v2420_v28 }
 0x2cf   :  { %2255 = vmatpush3.bf16.msra.mxu0 %v2516_v3  ;;  %v2422_v3 = vmov 0.0  }
 0x2d0   :  { %1991 = vmatmul.mubr.f32.gmra.mrb[18].mxu0 %v2614_v30  ;;  %2256 = vmatprep.subr.bf16.mxu0 %v2420_v28 }
 0x2d1   :  { %1993 = vmatprep.mubr.f32.mxu0 %v2619_v31  ;;  %2043 = vmatprep.mubr.msk.f32.mxu1 %vm2421_vm4, %v2422_v3 }
 0x2d3   :  { %2258 = vmatpush3.bf16.msra.mxu0 %v2521_v5  ;;  %v2795_v5 = vld [vmem:[%s3008_s2 + $0x10] sm:$0xff] }
 0x2d4   :  { %1994 = vmatmul.mubr.f32.gmra.mrb[20].mxu0 %v2626_v32  ;;  %2259 = vmatprep.subr.bf16.mxu0 %v2420_v28 }
 0x2d5   :  { %1996 = vmatprep.mubr.f32.mxu0 %v2631_v33 }
 0x2d7   :  { %2261 = vmatpush3.bf16.msra.mxu0 %v2532_v8  ;;  %v1658_v8 = vld [vmem:[%s3016_s10 + $0x20] sm:$0xff] }
 0x2d8   :  { %1997 = vmatmul.mubr.f32.gmra.mrb[22].mxu0 %v2638_v34  ;;  %2262 = vmatprep.subr.bf16.mxu0 %v2420_v28 }
 0x2d9   :  { %1999 = vmatprep.mubr.f32.mxu0 %v2643_v35 }
 0x2db   :  { %2264 = vmatpush3.bf16.msra.mxu0 %v2548_v12  ;;  %v1659_v12 = vld [vmem:[%s3016_s10 + $0x28] sm:$0xff] }
 0x2dc   :  { %2000 = vmatmul.mubr.f32.gmra.mrb[24].mxu0 %v2650_v36  ;;  %2265 = vmatprep.subr.bf16.mxu0 %v2420_v28 }
 0x2dd   :  { %2002 = vmatprep.mubr.f32.mxu0 %v2655_v37 }
 0x2df   :  { %2267 = vmatpush3.bf16.msra.mxu0 %v2564_v18  ;;  %v2296_v18 = vpack.c.bf16 %v1659_v12, %v1658_v8 }
 0x2e0   :  { %2003 = vmatmul.mubr.f32.gmra.mrb[26].mxu0 %v2662_v38  ;;  %2268 = vmatprep.subr.bf16.mxu0 %v2420_v28 }
 0x2e1   :  { %2005 = vmatprep.mubr.f32.mxu0 %v2667_v39 }
 0x2e3   :  { %2270 = vmatpush3.bf16.msra.mxu0 %v2574_v21  ;;  %v2810_v21 = vld [vmem:[%s3013_s7] ss:$0 sm:$0xff] }
 0x2e4   :  { %2006 = vmatmul.mubr.f32.gmra.mrb[28].mxu0 %v2674_v40  ;;  %2271 = vmatprep.subr.bf16.mxu0 %v2420_v28 }
 0x2e5   :  { %2008 = vmatprep.mubr.f32.mxu0 %v2679_v41 }
 0x2e7   :  { %2273 = vmatpush3.bf16.msra.mxu0 %v2584_v24 }
 0x2e8   :  { %2009 = vmatmul.mubr.f32.gmra.mrb[30].mxu0 %v2686_v42  ;;  %2274 = vmatprep.subr.bf16.mxu0 %v2420_v28 }
 0x2e9   :  { %2084 = vmatprep.mubr.msk.f32.mxu0 %vm2421_vm4, %v2422_v3 }
 0x2eb   :  { %2276 = vmatpush3.bf16.msra.mxu0 %v2594_v27 }
 0x2ec   :  { %2295 = vmatprep.subr.bf16.mxu0 %v2420_v28 }
 0x2ee   :  { %2085 = vmatmul.mubr.f32.vlgmr.msra.gmra.mrb[32].mxu0 %v2795_v5 }
 0x2ef   :  { %2128 = vmatprep.mubr.msk.f32.mxu0 %vm2421_vm4, %v2422_v3  ;;  %2297 = vmatpush3.bf16.msra.mxu0 %v2296_v18 }
 0x2f0   :  { %2298 = vmatprep.subr.bf16.mxu0 %v2420_v28 }
 0x39f   :  { %v1989_v24 = vpop.f32.mrb[16].mxu0 }
 0x3a0   :  { %v757_v27 = vadd.f32 %v1989_v24, %v2810_v21  ;;  %v751_v29 = vpop.f32.mrb[17].mxu0 }
 0x3a1   :  { %v752_v30 = vadd.f32 %v2810_v21, %v751_v29 }
 0x3a2   :  { %vm831_vm5 = vcmp.ge.f32.partialorder %v757_v27, 0.0  ;;  %v847_v31 = vmul.f32 0.01, %v757_v27 }
 0x3a3   :  { %vm830_vm6 = vcmp.ge.f32.partialorder %v752_v30, 0.0  ;;  %v846_v32 = vmul.f32 0.01, %v752_v30  ;;  %v1992_v33 = vpop.f32.mrb[18].mxu0 }
 0x3a4   :  { %v863_v34 = vsel %vm831_vm5, %v757_v27, %v847_v31  ;;  %v767_v35 = vadd.f32 %v1992_v33, %v2810_v21  ;;  %v761_v36 = vpop.f32.mrb[19].mxu0 }
 0x3a5   :  { %v862_v37 = vsel %vm830_vm6, %v752_v30, %v846_v32  ;;  %v762_v38 = vadd.f32 %v2810_v21, %v761_v36 }
 0x3a6   :  { %v2230_v39 = vpack.c.bf16 %v863_v34, %v862_v37  ;;  %vm833_vm7 = vcmp.ge.f32.partialorder %v767_v35, 0.0  ;;  %v849_v40 = vmul.f32 0.01, %v767_v35 }
 0x3a7   :  { %vm832_vm8 = vcmp.ge.f32.partialorder %v762_v38, 0.0  ;;  %v848_v41 = vmul.f32 0.01, %v762_v38  ;;  %v1995_v42 = vpop.f32.mrb[20].mxu0 }
 0x3a8   :  { %v865_v13 = vsel %vm833_vm7, %v767_v35, %v849_v40  ;;  %v777_v14 = vadd.f32 %v1995_v42, %v2810_v21  ;;  %v771_v15 = vpop.f32.mrb[21].mxu0  ;;  %2231 = vmatpush3.bf16.msra.mxu1 %v2230_v39  ;;  %v80_v40 = vld [vmem:[%s3008_s2] sm:$0xff]  ;;  %v81_v42 = vld [vmem:[%s3008_s2 + $0x8] sm:$0xff] }
 0x3a9   :  { %v864_v16 = vsel %vm832_vm8, %v762_v38, %v848_v41  ;;  %v772_v17 = vadd.f32 %v2810_v21, %v771_v15  ;;  %2232 = vmatprep.subr.bf16.mxu1 %v2420_v28  ;;  %v1646_v38 = vld [vmem:[%s3014_s8 + $0x20] sm:$0xff] }
 0x3aa   :  { %v2233_v19 = vpack.c.bf16 %v865_v13, %v864_v16  ;;  %vm835_vm9 = vcmp.ge.f32.partialorder %v777_v14, 0.0  ;;  %v851_v20 = vmul.f32 0.01, %v777_v14  ;;  %v1648_v13 = vld [vmem:[%s3014_s8 + $0x30] sm:$0xff] }
 0x3ab   :  { %vm834_vm10 = vcmp.ge.f32.partialorder %v772_v17, 0.0  ;;  %v850_v22 = vmul.f32 0.01, %v772_v17  ;;  %v1998_v23 = vpop.f32.mrb[22].mxu0  ;;  %v1660_v16 = vld [vmem:[%s3016_s10 + $0x30] sm:$0xff] }
 0x3ac   :  { %v867_v25 = vsel %vm835_vm9, %v777_v14, %v851_v20  ;;  %v787_v26 = vadd.f32 %v1998_v23, %v2810_v21  ;;  %v781_v43 = vpop.f32.mrb[23].mxu0  ;;  %2234 = vmatpush3.bf16.msra.mxu1 %v2233_v19  ;;  %v1649_v14 = vld [vmem:[%s3014_s8 + $0x38] sm:$0xff]  ;;  %v1029_v23 = vld [vmem:[%s3014_s8 + $0x8] sm:$0xff] }
 0x3ad   :  { %v866_v44 = vsel %vm834_vm10, %v772_v17, %v850_v22  ;;  %v782_v45 = vadd.f32 %v2810_v21, %v781_v43  ;;  %2235 = vmatprep.subr.bf16.mxu1 %v2420_v28  ;;  %v2281_v15 = vpack.c.bf16 %v1649_v14, %v1648_v13  ;;  %v1028_v22 = vld [vmem:[%s3014_s8] sm:$0xff]  ;;  %v1665_v43 = vld [vmem:[%s3016_s10 + $0x48] sm:$0xff] }
 0x3ae   :  { %v2236_v46 = vpack.c.bf16 %v867_v25, %v866_v44  ;;  %vm837_vm11 = vcmp.ge.f32.partialorder %v787_v26, 0.0  ;;  %v853_v47 = vmul.f32 0.01, %v787_v26  ;;  %v83_v14 = vld [vmem:[%s3009_s3] sm:$0xff]  ;;  %s2424_s3 = smov [#allocation2]  }
 0x3af   :  { %vm836_vm12 = vcmp.ge.f32.partialorder %v782_v45, 0.0  ;;  %v852_v48 = vmul.f32 0.01, %v782_v45  ;;  %v2001_v49 = vpop.f32.mrb[24].mxu0  ;;  %s1563_s26 = sshll.u32 %s2424_s3, 4  ;;  %s1564_s26 = int_to_ptr.vmem [resolvable:$true] %s1563_s26 }
 0x3b0   :  { %v869_v50 = vsel %vm837_vm11, %v787_v26, %v853_v47  ;;  %v797_v51 = vadd.f32 %v2001_v49, %v2810_v21  ;;  %v791_v1 = vpop.f32.mrb[25].mxu0  ;;  %2237 = vmatpush3.bf16.msra.mxu1 %v2236_v46  ;;  %v1664_v26 = vld [vmem:[%s3016_s10 + $0x40] sm:$0xff]  ;;  %v1030_v46 = vld [vmem:[%s3014_s8 + $0x10] sm:$0xff]  ;;  %v1031_v47 = vld [vmem:[%s3014_s8 + $0x18] sm:$0xff] }
 0x3b1   :  { %v868_v52 = vsel %vm836_vm12, %v782_v45, %v852_v48  ;;  %v792_v53 = vadd.f32 %v2810_v21, %v791_v1  ;;  %2238 = vmatprep.subr.bf16.mxu1 %v2420_v28  ;;  %v2284_v45 = vpack.c.bf16 %v1029_v23, %v1028_v22  ;;  %v2308_v48 = vpack.c.bf16 %v1665_v43, %v1664_v26 }
 0x3b2   :  { %v2239_v54 = vpack.c.bf16 %v869_v50, %v868_v52  ;;  %vm839_vm13 = vcmp.ge.f32.partialorder %v797_v51, 0.0  ;;  %v855_v55 = vmul.f32 0.01, %v797_v51  ;;  %v1666_v50 = vld [vmem:[%s3016_s10 + $0x50] sm:$0xff]  ;;  %v2287_v52 = vpack.c.bf16 %v1031_v47, %v1030_v46 }
 0x3b3   :  { %vm838_vm14 = vcmp.ge.f32.partialorder %v792_v53, 0.0  ;;  %v854_v56 = vmul.f32 0.01, %v792_v53  ;;  %v2004_v57 = vpop.f32.mrb[26].mxu0 }
 0x3b4   :  { %v871_v58 = vsel %vm839_vm13, %v797_v51, %v855_v55  ;;  %v807_v59 = vadd.f32 %v2004_v57, %v2810_v21  ;;  %v801_v60 = vpop.f32.mrb[27].mxu0  ;;  %2240 = vmatpush3.bf16.msra.mxu1 %v2239_v54  ;;  %v1667_v51 = vld [vmem:[%s3016_s10 + $0x58] sm:$0xff]  ;;  %v1653_v54 = vld [vmem:[%s3014_s8 + $0x48] sm:$0xff] }
 0x3b5   :  { %v870_v61 = vsel %vm838_vm14, %v792_v53, %v854_v56  ;;  %v802_v62 = vadd.f32 %v2810_v21, %v801_v60  ;;  %2241 = vmatprep.subr.bf16.mxu1 %v2420_v28  ;;  %v1652_v53 = vld [vmem:[%s3014_s8 + $0x40] sm:$0xff]  ;;  %v2311_v55 = vpack.c.bf16 %v1667_v51, %v1666_v50  ;;  %v1655_v60 = vld [vmem:[%s3014_s8 + $0x58] sm:$0xff] }
 0x3b6   :  { %v2242_v63 = vpack.c.bf16 %v871_v58, %v870_v61  ;;  %vm841_vm15 = vcmp.ge.f32.partialorder %v807_v59, 0.0  ;;  %v857_v0 = vmul.f32 0.01, %v807_v59  ;;  %v2290_v58 = vpack.c.bf16 %v1653_v54, %v1652_v53 }
 0x3b7   :  { %vm840_vm1 = vcmp.ge.f32.partialorder %v802_v62, 0.0  ;;  %v856_v2 = vmul.f32 0.01, %v802_v62  ;;  %v2007_v4 = vpop.f32.mrb[28].mxu0 }
 0x3b8   :  { %v873_v6 = vsel %vm841_vm15, %v807_v59, %v857_v0  ;;  %v817_v7 = vadd.f32 %v2007_v4, %v2810_v21  ;;  %v811_v9 = vpop.f32.mrb[29].mxu0  ;;  %2243 = vmatpush3.bf16.msra.mxu1 %v2242_v63  ;;  %v1654_v59 = vld [vmem:[%s3014_s8 + $0x50] sm:$0xff]  ;;  %v1271_v63 = vld [vmem:[%s3016_s10 + $0x8] sm:$0xff]  ;;  %v1273_v4 = vld [vmem:[%s3016_s10 + $0x18] sm:$0xff] }
 0x3b9   :  { %v872_v10 = vsel %vm840_vm1, %v802_v62, %v856_v2  ;;  %v812_v11 = vadd.f32 %v2810_v21, %v811_v9  ;;  %2244 = vmatprep.subr.bf16.mxu1 %v2420_v28  ;;  %v2293_v61 = vpack.c.bf16 %v1655_v60, %v1654_v59  ;;  %v1270_v62 = vld [vmem:[%s3016_s10] sm:$0xff]  ;;  %v1272_v2 = vld [vmem:[%s3016_s10 + $0x10] sm:$0xff] }
 0x3ba   :  { %v2245_v8 = vpack.c.bf16 %v873_v6, %v872_v10  ;;  %vm843_vm2 = vcmp.ge.f32.partialorder %v817_v7, 0.0  ;;  %v859_v12 = vmul.f32 0.01, %v817_v7  ;;  %v2302_v0 = vpack.c.bf16 %v1271_v63, %v1270_v62 }
 0x3bb   :  { %vm842_vm5 = vcmp.ge.f32.partialorder %v812_v11, 0.0  ;;  %v858_v18 = vmul.f32 0.01, %v812_v11  ;;  %v2010_v24 = vpop.f32.mrb[30].mxu0  ;;  %v2305_v6 = vpack.c.bf16 %v1273_v4, %v1272_v2 }
 0x3bc   :  { %v875_v27 = vsel %vm843_vm2, %v817_v7, %v859_v12  ;;  %v827_v29 = vadd.f32 %v2010_v24, %v2810_v21  ;;  %v821_v30 = vpop.f32.mrb[31].mxu0  ;;  %2246 = vmatpush3.bf16.msra.mxu1 %v2245_v8 }
 0x3bd   :  { %v874_v31 = vsel %vm842_vm5, %v812_v11, %v858_v18  ;;  %v822_v32 = vadd.f32 %v2810_v21, %v821_v30  ;;  %2247 = vmatprep.subr.bf16.mxu1 %v2420_v28  ;;  %v1647_v21 = vld [vmem:[%s3014_s8 + $0x28] sm:$0xff] }
 0x3be   :  { %v2248_v33 = vpack.c.bf16 %v875_v27, %v874_v31  ;;  %vm845_vm6 = vcmp.ge.f32.partialorder %v827_v29, 0.0  ;;  %v861_v34 = vmul.f32 0.01, %v827_v29  ;;  %v2278_v41 = vpack.c.bf16 %v1647_v21, %v1646_v38  ;;  %v1669_v21 = vld [vmem:[%s3017_s11] ss:$0 sm:$0xff]  ;;  %s2423_s11 = smov [#allocation4]  }
 0x3bf   :  { %vm844_vm7 = vcmp.ge.f32.partialorder %v822_v32, 0.0  ;;  %v860_v35 = vmul.f32 0.01, %v822_v32  ;;  %s1573_s25 = sshll.u32 %s2423_s11, 4  ;;  %s1574_s25 = int_to_ptr.vmem [resolvable:$true] %s1573_s25 }
 0x3c0   :  { %v877_v36 = vsel %vm845_vm6, %v827_v29, %v861_v34  ;;  %2249 = vmatpush3.bf16.msra.mxu1 %v2248_v33  ;;  %s2326_s1 = scalar_lea.vmem %s1574_s25, 128  ;;  %p2331_p1 = scmp.lt.s32.totalorder %s1574_s25, %s1574_s25 }
 0x3c1   :  { %v876_v37 = vsel %vm844_vm7, %v822_v32, %v860_v35  ;;  %2250 = vmatprep.subr.bf16.mxu1 %v2420_v28  ;;  %v2870_v19 = vpop.f32.mrb[32].mxu0  ;;  %p2327_p0 = scmp.ne.s32.totalorder %s1574_s25, %s2326_s1  ;;  %p2332_p2 = scmp.lt.s32.totalorder %s2326_s1, %s2326_s1 }
 0x3c2   :  { %v2251_v39 = vpack.c.bf16 %v877_v36, %v876_v37  ;;  %v2086_v20 = vpop.f32.mrb[33].mxu0  ;;  %v1519_v7 = vmul.f32 %v2870_v19, %v2870_v19 }
 0x3c3   :  { %p2333_p3 = por %p2332_p2, %p2331_p1 }
 0x3c4   :  { %2252 = vmatpush3.bf16.msra.mxu1 %v2251_v39  ;;  %v1520_v9 = vsel %vm238_vm0, %v1519_v7, 0.0 }
 0x3c5   :  { %2277 = vmatprep.subr.bf16.mxu1 %v2420_v28  ;;  %1521 = vadd.xlane.f32.xlu0 %v1520_v9  ;;  %p2334_p4 = pnand %p2333_p3, %p2327_p0 }
 0x3c7   :  { %2044 = vmatmul.mubr.f32.vlgmr.msra.gmra.mrb[32].mxu1 %v80_v40 }
 0x3c8   :  { %2046 = vmatprep.mubr.msk.f32.mxu1 %vm2421_vm4, %v2422_v3  ;;  %2279 = vmatpush3.bf16.msra.mxu1 %v2278_v41 }
 0x3c9   :  { %2280 = vmatprep.subr.bf16.mxu1 %v2420_v28 }
 0x3cb   :  { %2047 = vmatmul.mubr.f32.gmra.mrb[34].mxu1 %v81_v42 }
 0x3cc   :  { %2049 = vmatprep.mubr.msk.f32.mxu1 %vm2421_vm4, %v2422_v3  ;;  %2282 = vmatpush3.bf16.msra.mxu1 %v2281_v15 }
 0x3cd   :  { %2283 = vmatprep.subr.bf16.mxu1 %v2420_v28 }
 0x3cf   :  { %2050 = vmatmul.mubr.f32.gmra.mrb[36].mxu1 %v2795_v5  ;;  %v1661_v5 = vld [vmem:[%s3016_s10 + $0x38] sm:$0xff] }
 0x3d0   :  { %2095 = vmatprep.mubr.msk.f32.mxu1 %vm2421_vm4, %v2422_v3  ;;  %v2299_v17 = vpack.c.bf16 %v1661_v5, %v1660_v16 }
 0x3d2   :  { %2300 = vmatpush3.bf16.msra.mxu0 %v2299_v17 }
 0x3d3   :  { %2307 = vmatprep.subr.bf16.mxu0 %v2420_v28 }
 0x49a   :  { %v944_v25 = vpop.f32.mrb[32].mxu1 }
 0x49b   :  { %v2045_v44 = vpop.f32.mrb[33].mxu1 }
 0x49e   :  { %v949_v49 = vpop.f32.mrb[34].mxu1 }
 0x49f   :  { %v2048_v1 = vpop.f32.mrb[35].mxu1  ;;  %2096 = vmatmul.mubr.msk.f32.vlgmr.msra.gmra.mrb[38].mxu1 %vm484_vm3, %v949_v49  ;;  %2129 = vmatmul.mubr.msk.f32.vlgmr.msra.gmra.mrb[34].mxu0 %vm484_vm3, %v949_v49 }
 0x4a0   :  { %2285 = vmatpush3.bf16.msra.mxu1 %v2284_v45  ;;  %2106 = vmatprep.mubr.msk.f32.mxu1 %vm2421_vm4, %v2422_v3 }
 0x4a1   :  { %2286 = vmatprep.subr.bf16.mxu1 %v2420_v28  ;;  %2309 = vmatpush3.bf16.msra.mxu0 %v2308_v48 }
 0x4a2   :  { %2310 = vmatprep.subr.bf16.mxu0 %v2420_v28  ;;  %v954_v56 = vpop.f32.mrb[36].mxu1  ;;  %2150 = vmatprep.mubr.msk.f32.mxu0 %vm2421_vm4, %v2422_v3 }
 0x4a3   :  { %v2051_v57 = vpop.f32.mrb[37].mxu1 }
 0x4a4   :  { %2288 = vmatpush3.bf16.msra.mxu1 %v2287_v52 }
 0x4a5   :  { %2289 = vmatprep.subr.bf16.mxu1 %v2420_v28  ;;  %2312 = vmatpush3.bf16.msra.mxu0 %v2311_v55 }
 0x4a7   :  { %2107 = vmatmul.mubr.msk.f32.vlgmr.msra.gmra.mrb[40].mxu1 %vm484_vm3, %v944_v25 }
 0x4a8   :  { %2291 = vmatpush3.bf16.msra.mxu1 %v2290_v58  ;;  %2117 = vmatprep.mubr.msk.f32.mxu1 %vm2421_vm4, %v2422_v3 }
 0x4a9   :  { %2292 = vmatprep.subr.bf16.mxu1 %v2420_v28  ;;  %2151 = vmatmul.mubr.msk.f32.vlgmr.msra.gmra.mrb[36].mxu0 %vm484_vm3, %v954_v56 }
 0x4ac   :  { %2294 = vmatpush3.bf16.msra.mxu1 %v2293_v61 }
 0x4ad   :  { %2301 = vmatprep.subr.bf16.mxu1 %v2420_v28 }
 0x4af   :  { %2118 = vmatmul.mubr.msk.f32.vlgmr.msra.gmra.mrb[42].mxu1 %vm484_vm3, %v954_v56 }
 0x4b0   :  { %2303 = vmatpush3.bf16.msra.mxu1 %v2302_v0  ;;  %2139 = vmatprep.mubr.msk.f32.mxu1 %vm2421_vm4, %v2422_v3 }
 0x4b1   :  { %2304 = vmatprep.subr.bf16.mxu1 %v2420_v28  ;;  %v1657_v28 = vld [vmem:[%s3015_s9] ss:$0 sm:$0xff] }
 0x4b4   :  { %2306 = vmatpush3.bf16.msra.mxu1 %v2305_v6 }
 0x4b7   :  { %2140 = vmatmul.mubr.msk.f32.vlgmr.msra.gmra.mrb[44].mxu1 %vm484_vm3, %v944_v25 }
 0x572   :  { %v1106_v10 = vpop.f32.mrb[38].mxu1  ;;  %v1345_v11 = vpop.f32.mrb[34].mxu0 }
 0x573   :  { %v2097_v8 = vpop.f32.mrb[39].mxu1  ;;  %v2130_v12 = vpop.f32.mrb[35].mxu0 }
 0x57a   :  { %v1179_v18 = vpop.f32.mrb[40].mxu1 }
 0x57b   :  { %v1180_v24 = vadd.f32 %v1179_v18, %v1106_v10  ;;  %v2108_v27 = vpop.f32.mrb[41].mxu1 }
 0x57c   :  { %v1490_v29 = vpop.f32.mrb[36].mxu0 }
 0x57d   :  { %v2152_v3 = vpop.f32.mrb[37].mxu0 }
 0x582   :  { %v1257_v30 = vpop.f32.mrb[42].mxu1 }
 0x583   :  { %v1261_v31 = vadd.f32 %v1257_v30, %v1180_v24  ;;  %v2119_v32 = vpop.f32.mrb[43].mxu1 }
 0x585   :  { %v1269_v33 = vadd.f32 %v1657_v28, %v1261_v31 }
 0x587   :  { %vm1503_vm3 = vcmp.ge.f32.partialorder %v1269_v33, 0.0  ;;  %v1504_v34 = vmul.f32 0.01, %v1269_v33 }
 0x589   :  { %v1505_v35 = vsel %vm1503_vm3, %v1269_v33, %v1504_v34 }
 0x58a   :  { %1547 = vst.msk [vmem:[#allocation4] sm:$0xff] %vm238_vm0, %v1505_v35  ;;  %v1415_v36 = vpop.f32.mrb[44].mxu1 }
 0x58b   :  { %v1416_v37 = vadd.f32 %v1415_v36, %v1345_v11  ;;  %v2141_v38 = vpop.f32.mrb[45].mxu1 }
 0x58d   :  { %v1494_v39 = vadd.f32 %v1490_v29, %v1416_v37 }
 0x58f   :  { %v1502_v40 = vadd.f32 %v1669_v21, %v1494_v39 }
 0x591   :  { %vm1506_vm4 = vcmp.ge.f32.partialorder %v1502_v40, 0.0  ;;  %v1507_v41 = vmul.f32 0.01, %v1502_v40 }
 0x593   :  { %v1508_v42 = vsel %vm1506_vm4, %v1502_v40, %v1507_v41 }
 0x594   :  { %v1509_v13 = vand.u32 2147483647, %v1508_v42 }
 0x596   :  { %v1510_v15 = vadd.f32 1e-09, %v1509_v13 }
 0x598   :  { %1548 = vst.msk [vmem:[#allocation6] sm:$0xff] %vm238_vm0, %v1510_v15  ;;  %v1511_v16 = vmul.f32 %v1510_v15, %v83_v14 }
 0x59a   :  { %v1512_v5 = vadd.f32 %v1511_v16, %v1505_v35 }
 0x59c   :  { %v1670_v17 = vclamps-f32 %v1512_v5, 1.0 }
 0x59e   :  { %v1531_v20 = vmul.f32 %v1670_v17, %v1670_v17  ;;  %1546 = vst.msk [vmem:[#allocation2] sm:$0xff] %vm238_vm0, %v1670_v17  ;;  %v1515_v22 = vmul.f32 %v1670_v17, %v2870_v19 }
 0x5a0   :  { %v1532_v23 = vsel %vm238_vm0, %v1531_v20, 0.0  ;;  %v1516_v25 = vsel %vm238_vm0, %v1515_v22, 0.0 }
 0x5a1   :  { %1533 = vadd.xlane.f32.xlu0 %v1532_v23  ;;  %1517 = vadd.xlane.f32.xlu1 %v1516_v25 }
 0x5a2   :  { %2337 = shalt.err (!%p2334_p4)
}
 0x5a3   :  { %s2338_s2 = scalar_lea.hbm %s3019_s13, 128 }
 0x5a4   :  { %p2339_p5 = scmp.ne.s32.totalorder %s3019_s13, %s2338_s2  ;;  %p2342_p6 = scmp.lt.u32.totalorder %s2338_s2, %s3019_s13 }
 0x5a6   :  { %p2344_p7 = pnand %p2342_p6, %p2339_p5 }
 0x5a8   :  { %2347 = shalt.err (!%p2344_p7)
}
 0x5a9   :  { %1576 = dma.vmem_to_hbm [thread:$0]  %s1574_s25, 128, %s3019_s13, [#allocation5]  }
 0x5aa   :  { %s2348_s17 = scalar_lea.vmem %s1564_s26, 128  ;;  %p2353_p9 = scmp.lt.s32.totalorder %s1564_s26, %s1564_s26 }
 0x5ab   :  { %p2349_p8 = scmp.ne.s32.totalorder %s1564_s26, %s2348_s17  ;;  %p2354_p10 = scmp.lt.s32.totalorder %s2348_s17, %s2348_s17 }
 0x5ad   :  { %p2355_p11 = por %p2354_p10, %p2353_p9 }
 0x5af   :  { %p2356_p12 = pnand %p2355_p11, %p2349_p8 }
 0x5b1   :  { %2359 = shalt.err (!%p2356_p12)
}
 0x5b2   :  { %s2360_s8 = scalar_lea.hbm %s3018_s12, 128 }
 0x5b3   :  { %p2361_p13 = scmp.ne.s32.totalorder %s3018_s12, %s2360_s8  ;;  %p2364_p0 = scmp.lt.u32.totalorder %s2360_s8, %s3018_s12 }
 0x5b5   :  { %p2366_p1 = pnand %p2364_p0, %p2361_p13 }
 0x5b7   :  { %2369 = shalt.err (!%p2366_p1)
}
 0x5b8   :  { %1566 = dma.vmem_to_hbm [thread:$0]  %s1564_s26, 128, %s3018_s12, [#allocation3]  }
 0x5b9   :  { %s2425_s22 = smov [#allocation6]  }
 0x5ba   :  { %s1583_s23 = sshll.u32 %s2425_s22, 4  ;;  %s1584_s23 = int_to_ptr.vmem [resolvable:$true] %s1583_s23 }
 0x5bb   :  { %s2370_s9 = scalar_lea.vmem %s1584_s23, 128  ;;  %p2375_p3 = scmp.lt.s32.totalorder %s1584_s23, %s1584_s23 }
 0x5bc   :  { %p2371_p2 = scmp.ne.s32.totalorder %s1584_s23, %s2370_s9  ;;  %p2376_p4 = scmp.lt.s32.totalorder %s2370_s9, %s2370_s9 }
 0x5be   :  { %p2377_p5 = por %p2376_p4, %p2375_p3 }
 0x5c0   :  { %p2378_p6 = pnand %p2377_p5, %p2371_p2 }
 0x5c2   :  { %2381 = shalt.err (!%p2378_p6)
}
 0x5c3   :  { %s2382_s25 = scalar_lea.hbm %s3020_s14, 128 }
 0x5c4   :  { %p2383_p7 = scmp.ne.s32.totalorder %s3020_s14, %s2382_s25  ;;  %p2386_p8 = scmp.lt.u32.totalorder %s2382_s25, %s3020_s14 }
 0x5c6   :  { %p2388_p9 = pnand %p2386_p8, %p2383_p7 }
 0x5c8   :  { %2391 = shalt.err (!%p2388_p9)
}
 0x5c9   :  { %1586 = dma.vmem_to_hbm [thread:$0]  %s1584_s23, 128, %s3020_s14, [#allocation5]   ;;  %v1522_v19 = vpop.xlane.xlu0 %1521  ;;  %vm1555_vm11 = vcmask 0  }
 0x5ca   :  { %2320 = vrsqrt.f32 %v1522_v19  ;;  %vm1525_vm0 = vcmp.eq.f32.partialorder %v1522_v19, inf  ;;  %v1528_v45 = vand.u32 2147483648, %v1522_v19  ;;  %vm1527_vm8 = vcmp.eq.f32.partialorder %v1522_v19, 0.0  ;;  %s2426_s14 = smov [#allocation7]  }
 0x5cb   :  { %s1593_s2 = sshll.u32 %s2426_s14, 4  ;;  %s1594_s2 = int_to_ptr.vmem [resolvable:$true] %s1593_s2 }
 0x5cc   :  { %s2392_s28 = scalar_lea.vmem %s1594_s2, 16  ;;  %s2396_s5 = scalar_lea.vmem %s1594_s2, 32 }
 0x5cd   :  { %p2393_p10 = scmp.ne.s32.totalorder %s1594_s2, %s2392_s28  ;;  %p2397_p11 = scmp.lt.s32.totalorder %s1594_s2, %s1594_s2 }
 0x5ce   :  { %p2398_p12 = scmp.lt.s32.totalorder %s2396_s5, %s2392_s28 }
 0x5d0   :  { %p2399_p13 = por %p2398_p12, %p2397_p11 }
 0x5d2   :  { %p2400_p0 = pnand %p2399_p13, %p2393_p10 }
 0x5d4   :  { %v2321_v43 = vpop.eup %2320 }
 0x5d5   :  { %v1524_v44 = vmul.f32 %v2321_v43, %v1522_v19 }
 0x5d7   :  { %v1526_v46 = vsel %vm1525_vm0, %v1522_v19, %v1524_v44 }
 0x5d8   :  { %v1529_v49 = vsel %vm1527_vm8, %v1528_v45, %v1526_v46 }
 0x5d9   :  { %v1530_v53 = vmax.f32 %v1529_v49, 1e-08 }
 0x62e   :  { %v1534_v26 = vpop.xlane.xlu0 %1533  ;;  %v1518_v56 = vpop.xlane.xlu1 %1517 }
 0x62f   :  { %2322 = vrsqrt.f32 %v1534_v26  ;;  %vm1537_vm9 = vcmp.eq.f32.partialorder %v1534_v26, inf  ;;  %v1540_v50 = vand.u32 2147483648, %v1534_v26  ;;  %vm1539_vm10 = vcmp.eq.f32.partialorder %v1534_v26, 0.0 }
 0x639   :  { %v2323_v47 = vpop.eup %2322 }
 0x63a   :  { %v1536_v48 = vmul.f32 %v2323_v47, %v1534_v26 }
 0x63c   :  { %v1538_v51 = vsel %vm1537_vm9, %v1534_v26, %v1536_v48 }
 0x63d   :  { %v1541_v1 = vsel %vm1539_vm10, %v1540_v50, %v1538_v51 }
 0x63e   :  { %v1542_v52 = vmax.f32 %v1541_v1, 1e-08 }
 0x640   :  { %v1543_v54 = vmul.f32 %v1542_v52, %v1530_v53 }
 0x642   :  { %2324 = vrcp.f32 %v1543_v54 }
 0x64c   :  { %v2325_v55 = vpop.eup %2324 }
 0x64d   :  { %v1545_v57 = vmul.f32 %v2325_v55, %v1518_v56 }
 0x64f   :  { %v1549_v58 = vrot.slane %v1545_v57, 4 }
 0x651   :  { %v1550_v59 = vadd.f32 %v1549_v58, %v1545_v57 }
 0x653   :  { %v1551_v60 = vrot.slane %v1550_v59, 2 }
 0x655   :  { %v1552_v61 = vadd.f32 %v1551_v60, %v1550_v59 }
 0x657   :  { %v1553_v62 = vrot.slane %v1552_v61, 1 }
 0x659   :  { %v1554_v63 = vadd.f32 %v1553_v62, %v1552_v61 }
 0x65b   :  { %1556 = vst.msk [vmem:[#allocation7] sm:$0x1] %vm1555_vm11, %v1554_v63 }
 0x65c   :  { %2403 = shalt.err (!%p2400_p0)
}
 0x65d   :  { %s2404_s30 = scalar_lea.hbm %s3021_s15, 16 }
 0x65e   :  { %p2405_p1 = scmp.ne.s32.totalorder %s3021_s15, %s2404_s30  ;;  %p2408_p2 = scmp.lt.u32.totalorder %s2404_s30, %s3021_s15 }
 0x660   :  { %p2410_p3 = pnand %p2408_p2, %p2405_p1 }
 0x662   :  { %2413 = shalt.err (!%p2410_p3)
}
 0x663   :  { %1596 = dma.vmem_to_hbm [thread:$0]  %s1594_s2, 16, %s3021_s15, [#allocation8]  }
 0x664   :  { %2414 = dma.done.wait [#allocation3], 128  }
 0x665   :  { %2415 = vsyncadd [#allocation3], 4294967168 }
 0x666   :  { %2416 = dma.done.wait [#allocation5], 256  }
 0x667   :  { %2417 = vsyncadd [#allocation5], 4294967040 }
 0x668   :  { %2418 = dma.done.wait [#allocation8], 16  }
 0x669   :  { %2419 = vsyncadd [#allocation8], 4294967280 }
 0x66a   :  { %1609 = vsyncpa [#allocation3], 1 }
 0x66b   :  { %1610 = vsyncpa [#allocation5], 1 }
 0x66c   :  { %1611 = vsyncpa [#allocation8], 1 }

</bundles_post_ra>
